<compile_context>
chip_gen: v7x
topology: tpu7x:2x2x1
jax: 0.10.0
libtpu: 0.0.40
codegen_flags: <defaults>
</compile_context>

<pallas_src>
import math
import jax
import jax.numpy as jnp
from jax.experimental import pallas as pl
from jax.experimental.pallas import tpu as pltpu

INPUT_SIZE = 100
HIDDEN_SIZE = 256
OUTPUT_SIZE = 784


def _round_up(x, m):
    return ((x + m - 1) // m) * m


def _generator_kernel(x_ref, w1_ref, b1_ref, w2_ref, b2_ref, w3_ref, b3_ref, o_ref):
    # x tile: (TB, 100) f32; weights are resident bf16 tiles; biases f32 (1, N).
    x = x_ref[...].astype(jnp.bfloat16)

    # fc1 + ReLU  (bf16 operands on the MXU, f32 accumulate; ragged K=100 is fine)
    h1 = jnp.dot(x, w1_ref[...], preferred_element_type=jnp.float32) + b1_ref[...]
    h1 = jnp.maximum(h1, 0.0)                                    # (TB, 256)

    # fc2 + ReLU
    h2 = jnp.dot(h1.astype(jnp.bfloat16), w2_ref[...],
                 preferred_element_type=jnp.float32) + b2_ref[...]
    h2 = jnp.maximum(h2, 0.0)                                    # (TB, 256)

    # fc3 (no activation) -> stored at true width 784 (no padded columns)
    out = jnp.dot(h2.astype(jnp.bfloat16), w3_ref[...],
                  preferred_element_type=jnp.float32) + b3_ref[...]
    o_ref[...] = out.astype(o_ref.dtype)                         # (TB, 784)


def init_params(key):
    """f32 params mimicking nn.Linear default init U(-1/sqrt(fan_in), +1/sqrt(fan_in))."""
    ks = jax.random.split(key, 6)

    def linear(kw, kb, fan_in, fan_out):
        bound = 1.0 / math.sqrt(fan_in)
        w = jax.random.uniform(kw, (fan_in, fan_out), jnp.float32, -bound, bound)
        b = jax.random.uniform(kb, (1, fan_out), jnp.float32, -bound, bound)
        return w, b

    w1, b1 = linear(ks[0], ks[1], INPUT_SIZE, HIDDEN_SIZE)
    w2, b2 = linear(ks[2], ks[3], HIDDEN_SIZE, HIDDEN_SIZE)
    w3, b3 = linear(ks[4], ks[5], HIDDEN_SIZE, OUTPUT_SIZE)
    return {"w1": w1, "b1": b1, "w2": w2, "b2": b2, "w3": w3, "b3": b3}


def pack_params(p):
    """Cast weights to bf16 for the kernel (no padding needed anymore); biases stay f32."""
    return {
        "w1": p["w1"].astype(jnp.bfloat16), "b1": p["b1"],
        "w2": p["w2"].astype(jnp.bfloat16), "b2": p["b2"],
        "w3": p["w3"].astype(jnp.bfloat16), "b3": p["b3"],
    }


def generator_forward(x, packed, *, out_dtype=jnp.float32):
    """x: (B, 100) f32. packed: pack_params(...) output. Returns (B, 784) in out_dtype."""
    B = x.shape[0]
    # Batch tile: multiple of 256, capped at 1024 (per-step VMEM ~15 MiB).
    TB = min(1024, _round_up(max(B, 1), 256))
    B_pad = _round_up(B, TB)
    num_steps = B_pad // TB

    x_in = x if B_pad == B else jnp.zeros((B_pad, INPUT_SIZE), x.dtype).at[:B].set(x)

    w1, b1 = packed["w1"], packed["b1"]
    w2, b2 = packed["w2"], packed["b2"]
    w3, b3 = packed["w3"], packed["b3"]

    # Constant block index -> DMA'd once, stays resident in VMEM across grid steps.
    def resident(a):
        return pl.BlockSpec(a.shape, lambda i: (0,) * a.ndim)

    # Split batch tiles across v7x's two TensorCores when there is >1 grid step.
    batch_sem = pltpu.CORE_PARALLEL if num_steps > 1 else pltpu.ARBITRARY

    out = pl.pallas_call(
        _generator_kernel,
        out_shape=jax.ShapeDtypeStruct((B_pad, OUTPUT_SIZE), out_dtype),
        grid_spec=pltpu.PrefetchScalarGridSpec(
            num_scalar_prefetch=0,
            grid=(num_steps,),
            in_specs=[
                pl.BlockSpec((TB, INPUT_SIZE), lambda i: (i, 0)),   # x: tiled over batch
                resident(w1), resident(b1),
                resident(w2), resident(b2),
                resident(w3), resident(b3),
            ],
            out_specs=pl.BlockSpec((TB, OUTPUT_SIZE), lambda i: (i, 0)),
        ),
        compiler_params=pltpu.CompilerParams(
            dimension_semantics=(batch_sem,),
            vmem_limit_bytes=32 * 1024 * 1024,   # v5e default scoped VMEM is only 16 MiB
        ),
    )(x_in, w1, b1, w2, b2, w3, b3)

    return out if B_pad == B else out[:B]


def reference_forward(x, p):
    """Pure-JAX f32 reference of the PyTorch module."""
    h1 = jnp.maximum(x @ p["w1"] + p["b1"], 0.0)
    h2 = jnp.maximum(h1 @ p["w2"] + p["b2"], 0.0)
    return h2 @ p["w3"] + p["b3"]


if __name__ == "__main__":
    key = jax.random.PRNGKey(0)
    k_param, k_x1, k_x2, k_x3 = jax.random.split(key, 4)

    params = init_params(k_param)
    packed = pack_params(params)

    def check(x, name):
        out = jax.block_until_ready(generator_forward(x, packed))
        ref = reference_forward(x, params)
        assert out.shape == (x.shape[0], OUTPUT_SIZE), out.shape
        # bf16 matmul operands (f32 accumulate) vs f32 reference -> loosened tolerance.
        assert jnp.allclose(out, ref, atol=5e-2, rtol=5e-2), f"mismatch vs JAX reference ({name})"

    # Small batch: single grid step (TB=256), exercises row pad + row slice.
    check(jax.random.normal(k_x1, (8, INPUT_SIZE), jnp.float32), "batch=8")

    # Mid batch, non-aligned: TB=512, single step.
    check(jax.random.normal(k_x2, (300, INPUT_SIZE), jnp.float32), "batch=300")

    # Larger batch: TB=1024, 3 grid steps -> exercises pipelined multi-step grid and the
    # CORE_PARALLEL batch-axis semantics (both TensorCores on v7x).
    check(jax.random.normal(k_x3, (2100, INPUT_SIZE), jnp.float32), "batch=2100")

    print("KERNEL_OK")
</pallas_src>

<mosaic_0001>
module attributes {stable_mosaic.version = 11 : i64} {
  func.func @_generator_kernel(%arg0: i32, %arg1: memref<256x100xf32, #tpu.memory_space<vmem>>, %arg2: memref<100x256xbf16, #tpu.memory_space<vmem>>, %arg3: memref<1x256xf32, #tpu.memory_space<vmem>>, %arg4: memref<256x256xbf16, #tpu.memory_space<vmem>>, %arg5: memref<1x256xf32, #tpu.memory_space<vmem>>, %arg6: memref<256x784xbf16, #tpu.memory_space<vmem>>, %arg7: memref<1x784xf32, #tpu.memory_space<vmem>>, %arg8: memref<256x784xf32, #tpu.memory_space<vmem>>) attributes {dimension_semantics = [#tpu.dimension_semantics<arbitrary>], iteration_bounds = array<i64: 1>, scalar_prefetch = 0 : i64, scratch_operands = 0 : i64, tpu.core_type = #tpu.core_type<tc>, window_params = [{transform_indices = @transform_0, window_bounds = array<i64: 256, 100>}, {pipeline_mode = #tpu.pipeline_mode<synchronous>, transform_indices = @transform_1, window_bounds = array<i64: 100, 256>}, {pipeline_mode = #tpu.pipeline_mode<synchronous>, transform_indices = @transform_2, window_bounds = array<i64: 1, 256>}, {pipeline_mode = #tpu.pipeline_mode<synchronous>, transform_indices = @transform_3, window_bounds = array<i64: 256, 256>}, {pipeline_mode = #tpu.pipeline_mode<synchronous>, transform_indices = @transform_4, window_bounds = array<i64: 1, 256>}, {pipeline_mode = #tpu.pipeline_mode<synchronous>, transform_indices = @transform_5, window_bounds = array<i64: 256, 784>}, {pipeline_mode = #tpu.pipeline_mode<synchronous>, transform_indices = @transform_6, window_bounds = array<i64: 1, 784>}, {transform_indices = @transform_7, window_bounds = array<i64: 256, 784>}]} {
    %c0 = arith.constant 0 : index
    %c0_0 = arith.constant 0 : index
    %0 = vector.load %arg1[%c0, %c0_0] : memref<256x100xf32, #tpu.memory_space<vmem>>, vector<256x100xf32>
    %1 = arith.truncf %0 : vector<256x100xf32> to vector<256x100xbf16>
    %c0_1 = arith.constant 0 : index
    %c0_2 = arith.constant 0 : index
    %2 = vector.load %arg2[%c0_1, %c0_2] : memref<100x256xbf16, #tpu.memory_space<vmem>>, vector<100x256xbf16>
    %cst = arith.constant dense<0.000000e+00> : vector<256x256xf32>
    %3 = tpu.matmul %1, %2, %cst {dimension_numbers = #tpu.dot_dimension_numbers<[1], [0], [0], [1], [0, 0, 1, 1], [], []>} : vector<256x100xbf16>, vector<100x256xbf16>, vector<256x256xf32> -> vector<256x256xf32>
    %c0_3 = arith.constant 0 : index
    %c0_4 = arith.constant 0 : index
    %4 = vector.load %arg3[%c0_3, %c0_4] : memref<1x256xf32, #tpu.memory_space<vmem>>, vector<1x256xf32>
    %5 = vector.broadcast %4 : vector<1x256xf32> to vector<256x256xf32>
    %6 = arith.addf %3, %5 : vector<256x256xf32>
    %cst_5 = arith.constant 0.000000e+00 : f32
    %7 = vector.broadcast %cst_5 : f32 to vector<256x256xf32>
    %8 = arith.maximumf %6, %7 : vector<256x256xf32>
    %9 = arith.truncf %8 : vector<256x256xf32> to vector<256x256xbf16>
    %c0_6 = arith.constant 0 : index
    %c0_7 = arith.constant 0 : index
    %10 = vector.load %arg4[%c0_6, %c0_7] : memref<256x256xbf16, #tpu.memory_space<vmem>>, vector<256x256xbf16>
    %cst_8 = arith.constant dense<0.000000e+00> : vector<256x256xf32>
    %11 = tpu.matmul %9, %10, %cst_8 {dimension_numbers = #tpu.dot_dimension_numbers<[1], [0], [0], [1], [0, 0, 1, 1], [], []>} : vector<256x256xbf16>, vector<256x256xbf16>, vector<256x256xf32> -> vector<256x256xf32>
    %c0_9 = arith.constant 0 : index
    %c0_10 = arith.constant 0 : index
    %12 = vector.load %arg5[%c0_9, %c0_10] : memref<1x256xf32, #tpu.memory_space<vmem>>, vector<1x256xf32>
    %13 = vector.broadcast %12 : vector<1x256xf32> to vector<256x256xf32>
    %14 = arith.addf %11, %13 : vector<256x256xf32>
    %cst_11 = arith.constant 0.000000e+00 : f32
    %15 = vector.broadcast %cst_11 : f32 to vector<256x256xf32>
    %16 = arith.maximumf %14, %15 : vector<256x256xf32>
    %17 = arith.truncf %16 : vector<256x256xf32> to vector<256x256xbf16>
    %c0_12 = arith.constant 0 : index
    %c0_13 = arith.constant 0 : index
    %18 = vector.load %arg6[%c0_12, %c0_13] : memref<256x784xbf16, #tpu.memory_space<vmem>>, vector<256x784xbf16>
    %cst_14 = arith.constant dense<0.000000e+00> : vector<256x784xf32>
    %19 = tpu.matmul %17, %18, %cst_14 {dimension_numbers = #tpu.dot_dimension_numbers<[1], [0], [0], [1], [0, 0, 1, 1], [], []>} : vector<256x256xbf16>, vector<256x784xbf16>, vector<256x784xf32> -> vector<256x784xf32>
    %c0_15 = arith.constant 0 : index
    %c0_16 = arith.constant 0 : index
    %20 = vector.load %arg7[%c0_15, %c0_16] : memref<1x784xf32, #tpu.memory_space<vmem>>, vector<1x784xf32>
    %21 = vector.broadcast %20 : vector<1x784xf32> to vector<256x784xf32>
    %22 = arith.addf %19, %21 : vector<256x784xf32>
    %c0_17 = arith.constant 0 : index
    %c0_18 = arith.constant 0 : index
    %23 = vector.load %arg8[%c0_17, %c0_18] : memref<256x784xf32, #tpu.memory_space<vmem>>, vector<256x784xf32>
    tpu.vector_store %arg8[%c0_17, %c0_18], %22 {strides = array<i32>} : memref<256x784xf32, #tpu.memory_space<vmem>>, vector<256x784xf32>,
    return
  }
  func.func @transform_0(%arg0: i32) -> (i32, i32) {
    %c0_i32 = arith.constant 0 : i32
    %c0_i32_0 = arith.constant 0 : i32
    return %arg0, %c0_i32 : i32, i32
  }
  func.func @transform_1(%arg0: i32) -> (i32, i32) {
    %c0_i32 = arith.constant 0 : i32
    %c0_i32_0 = arith.constant 0 : i32
    %c0_i32_1 = arith.constant 0 : i32
    return %c0_i32, %c0_i32_0 : i32, i32
  }
  func.func @transform_2(%arg0: i32) -> (i32, i32) {
    %c0_i32 = arith.constant 0 : i32
    %c0_i32_0 = arith.constant 0 : i32
    %c0_i32_1 = arith.constant 0 : i32
    return %c0_i32, %c0_i32_0 : i32, i32
  }
  func.func @transform_3(%arg0: i32) -> (i32, i32) {
    %c0_i32 = arith.constant 0 : i32
    %c0_i32_0 = arith.constant 0 : i32
    %c0_i32_1 = arith.constant 0 : i32
    return %c0_i32, %c0_i32_0 : i32, i32
  }
  func.func @transform_4(%arg0: i32) -> (i32, i32) {
    %c0_i32 = arith.constant 0 : i32
    %c0_i32_0 = arith.constant 0 : i32
    %c0_i32_1 = arith.constant 0 : i32
    return %c0_i32, %c0_i32_0 : i32, i32
  }
  func.func @transform_5(%arg0: i32) -> (i32, i32) {
    %c0_i32 = arith.constant 0 : i32
    %c0_i32_0 = arith.constant 0 : i32
    %c0_i32_1 = arith.constant 0 : i32
    return %c0_i32, %c0_i32_0 : i32, i32
  }
  func.func @transform_6(%arg0: i32) -> (i32, i32) {
    %c0_i32 = arith.constant 0 : i32
    %c0_i32_0 = arith.constant 0 : i32
    %c0_i32_1 = arith.constant 0 : i32
    return %c0_i32, %c0_i32_0 : i32, i32
  }
  func.func @transform_7(%arg0: i32) -> (i32, i32) {
    %c0_i32 = arith.constant 0 : i32
    %c0_i32_0 = arith.constant 0 : i32
    return %arg0, %c0_i32 : i32, i32
  }
}

</mosaic_0001>

<bundles_post_ra>
// kernel: tpu_custom_call.1
= control target key start
LH: loop header
LB: loop body
LE: loop exit
PB: predicated region body
PF: predicated region fallthrough
CT: control target
= control target key end

     0   :  { %v3245_v1 = vmov 0   ;;  %vm214_vm0 = vcmask 1041408   ;;  %vm165_vm1 = vcmask 818176   ;;  %vm2490_vm2 = vcmask 130048   ;;  %s5256_s1 = inlined_call_operand.vmem [shape: bf16[100,256], index: 1, kind: input, shape index: {}]   ;;  %s5257_s0 = inlined_call_operand.vmem [shape: f32[256,100], index: 0, kind: input, shape index: {}]   ;;  %s5258_s3 = inlined_call_operand.vmem [shape: bf16[256,256], index: 3, kind: input, shape index: {}]   ;;  %s5259_s5 = inlined_call_operand.vmem [shape: bf16[256,784], index: 5, kind: input, shape index: {}]   ;;  %s5260_s2 = inlined_call_operand.vmem [shape: f32[1,256], index: 2, kind: input, shape index: {}]   ;;  %s5261_s4 = inlined_call_operand.vmem [shape: f32[1,256], index: 4, kind: input, shape index: {}]   ;;  %s5262_s6 = inlined_call_operand.vmem [shape: f32[1,784], index: 6, kind: input, shape index: {}]   ;;  %s5263_s7 = inlined_call_operand.vmem [shape: f32[256,784], index: 7, kind: output, shape index: {}]  }
   0x1   :  { %v3017_v0 = vld [vmem:[%s5256_s1 + $0x4] ss:$8 sps:$4 sm:$0xff]   ;;  %253 = vmatprep.mubr.bf16.mxu0 %v3245_v1  ;;  %v3019_v2 = vld [vmem:[%s5256_s1] ss:$8 sps:$4 sm:$0xff]   ;;  %v3020_v3 = vld [vmem:[%s5256_s1 + $0x14] ss:$8 sps:$4 sm:$0xff]  }
   0x2   :  { %221 = vmatprep.subr.bf16.mxu0 %v3017_v0  ;;  %v3022_v4 = vld [vmem:[%s5256_s1 + $0x10] ss:$8 sps:$4 sm:$0xff]   ;;  %v3023_v5 = vld [vmem:[%s5256_s1 + $0x24] ss:$8 sps:$4 sm:$0xff]   ;;  %v3025_v6 = vld [vmem:[%s5256_s1 + $0x20] ss:$8 sps:$4 sm:$0xff]  }
   0x3   :  { %222 = vmatpush1.bf16.msra.mxu0 %v3019_v2  ;;  %v3026_v7 = vld [vmem:[%s5256_s1 + $0x34] ss:$8 sps:$4 sm:$0xff]   ;;  %v3028_v8 = vld [vmem:[%s5256_s1 + $0x30] ss:$8 sps:$4 sm:$0xff]   ;;  %v3029_v9 = vld [vmem:[%s5256_s1 + $0x44] ss:$8 sps:$4 sm:$0xff]  }
   0x4   :  { %223 = vmatprep.subr.bf16.mxu0 %v3020_v3  ;;  %v3031_v10 = vld [vmem:[%s5256_s1 + $0x40] ss:$8 sps:$4 sm:$0xff]   ;;  %v3032_v11 = vld [vmem:[%s5256_s1 + $0x54] ss:$8 sps:$4 sm:$0xff]   ;;  %v3034_v13 = vld [vmem:[%s5256_s1 + $0x50] ss:$8 sps:$4 sm:$0xff]  }
   0x5   :  { %v87_v12 = vld [vmem:[%s5256_s1 + $0x60] sm:$0x33]  ;;  %v28_v17 = vld [vmem:[%s5257_s0 + $0x8] sm:$0xff]  ;;  %v3040_v21 = vld [vmem:[%s5258_s3 + $0x14] ss:$8 sps:$4 sm:$0xff]  }
   0x6   :  { %v2726_v14 = vcombine.high %v87_v12, %v87_v12  ;;  %v2725_v15 = vcombine.low %v87_v12, %v87_v12  ;;  %v27_v16 = vld [vmem:[%s5257_s0] sm:$0xff]  ;;  %v3042_v23 = vld [vmem:[%s5258_s3 + $0x10] ss:$8 sps:$4 sm:$0xff]   ;;  %v3046_v28 = vld [vmem:[%s5258_s3 + $0x34] ss:$8 sps:$4 sm:$0xff]  }
   0x7   :  { %224 = vmatpush1.bf16.msra.mxu0 %v3022_v4  ;;  %v3037_v18 = vld [vmem:[%s5258_s3 + $0x4] ss:$8 sps:$4 sm:$0xff]   ;;  %v3039_v20 = vld [vmem:[%s5258_s3] ss:$8 sps:$4 sm:$0xff]   ;;  %v59_v22 = vpack.c.bf16 %v28_v17, %v27_v16  ;;  %v29_v25 = vld [vmem:[%s5257_s0 + $0x10] sm:$0xff] }
   0x8   :  { %225 = vmatprep.subr.bf16.mxu0 %v3023_v5  ;;  %v216_v19 = vsel %vm214_vm0, %v2725_v15, 0  ;;  %714 = vmatprep.subr.bf16.mxu1 %v3037_v18  ;;  %v3043_v24 = vld [vmem:[%s5258_s3 + $0x24] ss:$8 sps:$4 sm:$0xff]   ;;  %v30_v26 = vld [vmem:[%s5257_s0 + $0x18] sm:$0xff]  ;;  %v3045_v27 = vld [vmem:[%s5258_s3 + $0x20] ss:$8 sps:$4 sm:$0xff]  }
   0x9   :  { %715 = vmatpush1.bf16.msra.mxu1 %v3039_v20  ;;  %v60_v29 = vpack.c.bf16 %v30_v26, %v29_v25  ;;  %v3048_v30 = vld [vmem:[%s5258_s3 + $0x30] ss:$8 sps:$4 sm:$0xff]   ;;  %v3049_v31 = vld [vmem:[%s5258_s3 + $0x44] ss:$8 sps:$4 sm:$0xff]   ;;  %v3051_v34 = vld [vmem:[%s5258_s3 + $0x40] ss:$8 sps:$4 sm:$0xff]  }
   0xa   :  { %716 = vmatprep.subr.bf16.mxu1 %v3040_v21  ;;  %v31_v32 = vld [vmem:[%s5257_s0 + $0x20] sm:$0xff]  ;;  %v32_v33 = vld [vmem:[%s5257_s0 + $0x28] sm:$0xff]  ;;  %v3052_v35 = vld [vmem:[%s5258_s3 + $0x54] ss:$8 sps:$4 sm:$0xff]  }
   0xb   :  { %226 = vmatpush1.bf16.msra.mxu0 %v3025_v6  ;;  %v3054_v36 = vld [vmem:[%s5258_s3 + $0x50] ss:$8 sps:$4 sm:$0xff]   ;;  %v61_v37 = vpack.c.bf16 %v32_v33, %v31_v32  ;;  %v3055_v38 = vld [vmem:[%s5258_s3 + $0x64] ss:$8 sps:$4 sm:$0xff]   ;;  %v3057_v39 = vld [vmem:[%s5258_s3 + $0x60] ss:$8 sps:$4 sm:$0xff]  }
   0xc   :  { %227 = vmatprep.subr.bf16.mxu0 %v3026_v7  ;;  %v33_v40 = vld [vmem:[%s5257_s0 + $0x30] sm:$0xff]  ;;  %v34_v41 = vld [vmem:[%s5257_s0 + $0x38] sm:$0xff]  ;;  %v3061_v45 = vld [vmem:[%s5258_s3 + $0x84] ss:$8 sps:$4 sm:$0xff]  }
   0xd   :  { %717 = vmatpush1.bf16.msra.mxu1 %v3042_v23  ;;  %v3058_v42 = vld [vmem:[%s5258_s3 + $0x74] ss:$8 sps:$4 sm:$0xff]   ;;  %v62_v43 = vpack.c.bf16 %v34_v41, %v33_v40  ;;  %v3060_v44 = vld [vmem:[%s5258_s3 + $0x70] ss:$8 sps:$4 sm:$0xff]   ;;  %v3063_v46 = vld [vmem:[%s5258_s3 + $0x80] ss:$8 sps:$4 sm:$0xff]  }
   0xe   :  { %718 = vmatprep.subr.bf16.mxu1 %v3043_v24  ;;  %v35_v47 = vld [vmem:[%s5257_s0 + $0x40] sm:$0xff]  ;;  %v36_v48 = vld [vmem:[%s5257_s0 + $0x48] sm:$0xff]  ;;  %v3064_v49 = vld [vmem:[%s5258_s3 + $0x94] ss:$8 sps:$4 sm:$0xff]  }
   0xf   :  { %228 = vmatpush1.bf16.msra.mxu0 %v3028_v8  ;;  %v63_v50 = vpack.c.bf16 %v36_v48, %v35_v47  ;;  %v3066_v51 = vld [vmem:[%s5258_s3 + $0x90] ss:$8 sps:$4 sm:$0xff]   ;;  %v3067_v52 = vld [vmem:[%s5258_s3 + $0xa4] ss:$8 sps:$4 sm:$0xff]   ;;  %v3069_v53 = vld [vmem:[%s5258_s3 + $0xa0] ss:$8 sps:$4 sm:$0xff]  }
  0x10   :  { %229 = vmatprep.subr.bf16.mxu0 %v3029_v9  ;;  %v37_v54 = vld [vmem:[%s5257_s0 + $0x50] sm:$0xff]  ;;  %v38_v55 = vld [vmem:[%s5257_s0 + $0x58] sm:$0xff]  ;;  %v3073_v59 = vld [vmem:[%s5258_s3 + $0xc4] ss:$8 sps:$4 sm:$0xff]  }
  0x11   :  { %719 = vmatpush1.bf16.msra.mxu1 %v3045_v27  ;;  %v3070_v56 = vld [vmem:[%s5258_s3 + $0xb4] ss:$8 sps:$4 sm:$0xff]   ;;  %v64_v57 = vpack.c.bf16 %v38_v55, %v37_v54  ;;  %v3072_v58 = vld [vmem:[%s5258_s3 + $0xb0] ss:$8 sps:$4 sm:$0xff]   ;;  %v3075_v60 = vld [vmem:[%s5258_s3 + $0xc0] ss:$8 sps:$4 sm:$0xff]  }
  0x12   :  { %720 = vmatprep.subr.bf16.mxu1 %v3046_v28  ;;  %v39_v61 = vld [vmem:[%s5257_s0 + $0x60] sm:$0xff]  ;;  %v40_v62 = vld [vmem:[%s5257_s0 + $0x68] sm:$0xff]  ;;  %v3076_v63 = vld [vmem:[%s5258_s3 + $0xd4] ss:$8 sps:$4 sm:$0xff]  }
  0x13   :  { %230 = vmatpush1.bf16.msra.mxu0 %v3031_v10  ;;  %v65_v0 = vpack.c.bf16 %v40_v62, %v39_v61  ;;  %v41_v2 = vld [vmem:[%s5257_s0 + $0x70] sm:$0xff]  ;;  %v42_v3 = vld [vmem:[%s5257_s0 + $0x78] sm:$0xff]  ;;  %v43_v5 = vld [vmem:[%s5257_s0 + $0x80] sm:$0xff] }
  0x14   :  { %231 = vmatprep.subr.bf16.mxu0 %v3032_v11  ;;  %v66_v4 = vpack.c.bf16 %v42_v3, %v41_v2  ;;  %v44_v6 = vld [vmem:[%s5257_s0 + $0x88] sm:$0xff]  ;;  %v45_v8 = vld [vmem:[%s5257_s0 + $0x90] sm:$0xff]  ;;  %v46_v9 = vld [vmem:[%s5257_s0 + $0x98] sm:$0xff] }
  0x15   :  { %721 = vmatpush1.bf16.msra.mxu1 %v3048_v30  ;;  %v67_v7 = vpack.c.bf16 %v44_v6, %v43_v5  ;;  %v68_v10 = vpack.c.bf16 %v46_v9, %v45_v8  ;;  %v47_v11 = vld [vmem:[%s5257_s0 + $0xa0] sm:$0xff]  ;;  %v48_v12 = vld [vmem:[%s5257_s0 + $0xa8] sm:$0xff]  ;;  %v50_v15 = vld [vmem:[%s5257_s0 + $0xb8] sm:$0xff] }
  0x16   :  { %722 = vmatprep.subr.bf16.mxu1 %v3049_v31  ;;  %v3078_v16 = vld [vmem:[%s5258_s3 + $0xd0] ss:$8 sps:$4 sm:$0xff]   ;;  %v3079_v18 = vld [vmem:[%s5258_s3 + $0xe4] ss:$8 sps:$4 sm:$0xff]   ;;  %v3082_v20 = vld [vmem:[%s5258_s3 + $0xf4] ss:$8 sps:$4 sm:$0xff]  }
  0x17   :  { %232 = vmatpush1.bf16.msra.mxu0 %v3034_v13  ;;  %v69_v13 = vpack.c.bf16 %v48_v12, %v47_v11  ;;  %v51_v21 = vld [vmem:[%s5257_s0 + $0xc0] sm:$0xff]  ;;  %v3084_v23 = vld [vmem:[%s5258_s3 + $0xf0] ss:$8 sps:$4 sm:$0xff]   ;;  %v3096_v48 = vld [vmem:[%s5259_s5 + $0xac] ss:$28 sps:$4 sm:$0xff]  }
  0x18   :  { %2727 = vmatprep.subr.msk.bf16.mxu0 %vm214_vm0, %v2726_v14  ;;  %v49_v14 = vld [vmem:[%s5257_s0 + $0xb0] sm:$0xff]  ;;  %v54_v26 = vld [vmem:[%s5257_s0 + $0xd8] sm:$0xff]  ;;  %v55_v28 = vld [vmem:[%s5257_s0 + $0xe0] sm:$0xff] }
  0x19   :  { %723 = vmatpush1.bf16.msra.mxu1 %v3051_v34  ;;  %v70_v17 = vpack.c.bf16 %v50_v15, %v49_v14  ;;  %v53_v25 = vld [vmem:[%s5257_s0 + $0xd0] sm:$0xff]  ;;  %v58_v32 = vld [vmem:[%s5257_s0 + $0xf8] sm:$0xff]  ;;  %v3094_v47 = vld [vmem:[%s5259_s5 + $0xa8] ss:$28 sps:$4 sm:$0xff]  }
  0x1a   :  { %724 = vmatprep.subr.bf16.mxu1 %v3052_v35  ;;  %v72_v27 = vpack.c.bf16 %v54_v26, %v53_v25  ;;  %v57_v31 = vld [vmem:[%s5257_s0 + $0xf0] sm:$0xff]  ;;  %v3085_v34 = vld [vmem:[%s5259_s5] ss:$28 sps:$4 sm:$0xff]   ;;  %v3100_v5 = vld [vmem:[%s5259_s5 + $0x8] ss:$28 sps:$4 sm:$0xff]  }
  0x1b   :  { %234 = vmatpush1.bf16.msra.mxu0 %v216_v19  ;;  %v3081_v19 = vld [vmem:[%s5258_s3 + $0xe0] ss:$8 sps:$4 sm:$0xff]   ;;  %v74_v33 = vpack.c.bf16 %v58_v32, %v57_v31  ;;  %v3105_v61 = vld [vmem:[%s5259_s5 + $0x11c] ss:$28 sps:$4 sm:$0xff]   ;;  %v3111_v6 = vld [vmem:[%s5259_s5 + $0x154] ss:$28 sps:$4 sm:$0xff]  }
  0x1c   :  { %v3087_v35 = vld [vmem:[%s5259_s5 + $0x4] ss:$28 sps:$4 sm:$0xff]   ;;  %v3103_v2 = vld [vmem:[%s5259_s5 + $0x118] ss:$28 sps:$4 sm:$0xff]   ;;  %v3109_v14 = vld [vmem:[%s5259_s5 + $0x150] ss:$28 sps:$4 sm:$0xff]  }
  0x1d   :  { %725 = vmatpush1.bf16.msra.mxu1 %v3054_v36  ;;  %1744 = vmatprep.subr.bf16.mxu0 %v3087_v35  ;;  %v3088_v36 = vld [vmem:[%s5259_s5 + $0x38] ss:$28 sps:$4 sm:$0xff]   ;;  %v3097_v55 = vld [vmem:[%s5259_s5 + $0xe0] ss:$28 sps:$4 sm:$0xff]  }
  0x1e   :  { %2728 = vmatmul.mubr.msk.bf16.vlgmr.msra.gmra.mrb[0].mxu0 %vm165_vm1, %v59_v22  ;;  %726 = vmatprep.subr.bf16.mxu1 %v3055_v38  ;;  %v52_v22 = vld [vmem:[%s5257_s0 + $0xc8] sm:$0xff]  ;;  %v3108_v9 = vld [vmem:[%s5259_s5 + $0x44] ss:$28 sps:$4 sm:$0xff]   ;;  %v3120_v31 = vld [vmem:[%s5259_s5 + $0xb4] ss:$28 sps:$4 sm:$0xff]  }
  0x1f   :  { %263 = vmatprep.mubr.bf16.mxu0 %v3245_v1  ;;  %v71_v24 = vpack.c.bf16 %v52_v22, %v51_v21  ;;  %1745 = vmatpush1.bf16.msra.mxu0 %v3085_v34 }
  0x21   :  { %727 = vmatpush1.bf16.msra.mxu1 %v3057_v39  ;;  %v88_v39 = vld [vmem:[%s5260_s2] sm:$0x3] }
  0x22   :  { %728 = vmatprep.subr.bf16.mxu1 %v3058_v42  ;;  %v3091_v42 = vld [vmem:[%s5259_s5 + $0x70] ss:$28 sps:$4 sm:$0xff]  }
  0x25   :  { %729 = vmatpush1.bf16.msra.mxu1 %v3060_v44 }
  0x26   :  { %2729 = vmatmul.mubr.msk.bf16.gmra.mrb[4].mxu0 %vm165_vm1, %v60_v29  ;;  %730 = vmatprep.subr.bf16.mxu1 %v3061_v45  ;;  %v56_v29 = vld [vmem:[%s5257_s0 + $0xe8] sm:$0xff] }
  0x27   :  { %273 = vmatprep.mubr.bf16.mxu0 %v3245_v1  ;;  %v73_v30 = vpack.c.bf16 %v56_v29, %v55_v28  ;;  %v3123_v28 = vld [vmem:[%s5259_s5 + $0x1c4] ss:$28 sps:$4 sm:$0xff]  }
  0x29   :  { %731 = vmatpush1.bf16.msra.mxu1 %v3063_v46 }
  0x2a   :  { %732 = vmatprep.subr.bf16.mxu1 %v3064_v49 }
  0x2d   :  { %733 = vmatpush1.bf16.msra.mxu1 %v3066_v51 }
  0x2e   :  { %2730 = vmatmul.mubr.msk.bf16.gmra.mrb[8].mxu0 %vm165_vm1, %v61_v37  ;;  %734 = vmatprep.subr.bf16.mxu1 %v3067_v52  ;;  %v3090_v37 = vld [vmem:[%s5259_s5 + $0x3c] ss:$28 sps:$4 sm:$0xff]  }
  0x2f   :  { %283 = vmatprep.mubr.bf16.mxu0 %v3245_v1  ;;  %1746 = vmatprep.subr.bf16.mxu0 %v3090_v37  ;;  %v3118_v37 = vld [vmem:[%s5259_s5 + $0xb0] ss:$28 sps:$4 sm:$0xff]  }
  0x30   :  { %1747 = vmatpush1.bf16.msra.mxu0 %v3088_v36 }
  0x31   :  { %735 = vmatpush1.bf16.msra.mxu1 %v3069_v53 }
  0x32   :  { %736 = vmatprep.subr.bf16.mxu1 %v3070_v56  ;;  %v3099_v56 = vld [vmem:[%s5259_s5 + $0xe4] ss:$28 sps:$4 sm:$0xff]  }
  0x35   :  { %737 = vmatpush1.bf16.msra.mxu1 %v3072_v58  ;;  %v3102_v58 = vld [vmem:[%s5259_s5 + $0xc] ss:$28 sps:$4 sm:$0xff]  }
  0x36   :  { %2731 = vmatmul.mubr.msk.bf16.gmra.mrb[12].mxu0 %vm165_vm1, %v62_v43  ;;  %738 = vmatprep.subr.bf16.mxu1 %v3073_v59  ;;  %v3093_v43 = vld [vmem:[%s5259_s5 + $0x74] ss:$28 sps:$4 sm:$0xff]  }
  0x37   :  { %293 = vmatprep.mubr.bf16.mxu0 %v3245_v1  ;;  %1748 = vmatprep.subr.bf16.mxu0 %v3093_v43 }
  0x38   :  { %1749 = vmatpush1.bf16.msra.mxu0 %v3091_v42 }
  0x39   :  { %739 = vmatpush1.bf16.msra.mxu1 %v3075_v60  ;;  %1750 = vmatprep.subr.bf16.mxu0 %v3096_v48 }
  0x3a   :  { %740 = vmatprep.subr.bf16.mxu1 %v3076_v63 }
  0x3c   :  { %1751 = vmatpush1.bf16.msra.mxu0 %v3094_v47 }
  0x3d   :  { %741 = vmatpush1.bf16.msra.mxu1 %v3078_v16  ;;  %1752 = vmatprep.subr.bf16.mxu0 %v3099_v56  ;;  %v3106_v16 = vld [vmem:[%s5259_s5 + $0x40] ss:$28 sps:$4 sm:$0xff]  }
  0x3e   :  { %2732 = vmatmul.mubr.msk.bf16.gmra.mrb[16].mxu0 %vm165_vm1, %v63_v50  ;;  %742 = vmatprep.subr.bf16.mxu1 %v3079_v18 }
  0x3f   :  { %303 = vmatprep.mubr.bf16.mxu0 %v3245_v1 }
  0x40   :  { %1753 = vmatpush1.bf16.msra.mxu0 %v3097_v55 }
  0x41   :  { %743 = vmatpush1.bf16.msra.mxu1 %v3081_v19  ;;  %1754 = vmatprep.subr.bf16.mxu0 %v3105_v61  ;;  %v3133_v61 = vld [vmem:[%s5259_s5 + $0x230] ss:$28 sps:$4 sm:$0xff]  }
  0x42   :  { %744 = vmatprep.subr.bf16.mxu1 %v3082_v20  ;;  %v3114_v20 = vld [vmem:[%s5259_s5 + $0x7c] ss:$28 sps:$4 sm:$0xff]  }
  0x44   :  { %1755 = vmatpush1.bf16.msra.mxu0 %v3103_v2 }
  0x45   :  { %745 = vmatpush1.bf16.msra.mxu1 %v3084_v23  ;;  %1756 = vmatprep.subr.bf16.mxu0 %v3111_v6 }
  0x46   :  { %2733 = vmatmul.mubr.msk.bf16.gmra.mrb[20].mxu0 %vm165_vm1, %v64_v57  ;;  %1937 = vmatprep.subr.bf16.mxu1 %v3102_v58 }
  0x47   :  { %313 = vmatprep.mubr.bf16.mxu0 %v3245_v1 }
  0x48   :  { %1757 = vmatpush1.bf16.msra.mxu0 %v3109_v14 }
  0x4e   :  { %2734 = vmatmul.mubr.msk.bf16.gmra.mrb[24].mxu0 %vm165_vm1, %v65_v0 }
  0x4f   :  { %323 = vmatprep.mubr.bf16.mxu0 %v3245_v1 }
  0x56   :  { %2735 = vmatmul.mubr.msk.bf16.gmra.mrb[28].mxu0 %vm165_vm1, %v66_v4 }
  0x57   :  { %333 = vmatprep.mubr.bf16.mxu0 %v3245_v1 }
  0x5e   :  { %2736 = vmatmul.mubr.msk.bf16.gmra.mrb[32].mxu0 %vm165_vm1, %v67_v7 }
  0x5f   :  { %343 = vmatprep.mubr.bf16.mxu0 %v3245_v1 }
  0x66   :  { %2737 = vmatmul.mubr.msk.bf16.gmra.mrb[36].mxu0 %vm165_vm1, %v68_v10 }
  0x67   :  { %353 = vmatprep.mubr.bf16.mxu0 %v3245_v1 }
  0x6e   :  { %2738 = vmatmul.mubr.msk.bf16.gmra.mrb[40].mxu0 %vm165_vm1, %v69_v13 }
  0x6f   :  { %363 = vmatprep.mubr.bf16.mxu0 %v3245_v1 }
  0x76   :  { %2739 = vmatmul.mubr.msk.bf16.gmra.mrb[44].mxu0 %vm165_vm1, %v70_v17  ;;  %v3117_v17 = vld [vmem:[%s5259_s5 + $0x18c] ss:$28 sps:$4 sm:$0xff]  }
  0x77   :  { %373 = vmatprep.mubr.bf16.mxu0 %v3245_v1  ;;  %1758 = vmatprep.subr.bf16.mxu0 %v3117_v17  ;;  %v3145_v17 = vld [vmem:[%s5259_s5 + $0x2a0] ss:$28 sps:$4 sm:$0xff]  }
  0x7e   :  { %2740 = vmatmul.mubr.msk.bf16.gmra.mrb[48].mxu0 %vm165_vm1, %v71_v24  ;;  %v3115_v24 = vld [vmem:[%s5259_s5 + $0x188] ss:$28 sps:$4 sm:$0xff]  }
  0x7f   :  { %383 = vmatprep.mubr.bf16.mxu0 %v3245_v1  ;;  %1759 = vmatpush1.bf16.msra.mxu0 %v3115_v24  ;;  %v3150_v24 = vld [vmem:[%s5259_s5 + $0x1cc] ss:$28 sps:$4 sm:$0xff]  }
  0x80   :  { %1760 = vmatprep.subr.bf16.mxu0 %v3123_v28  ;;  %v3154_v28 = vld [vmem:[%s5259_s5 + $0x2d8] ss:$28 sps:$4 sm:$0xff]  }
  0x86   :  { %2741 = vmatmul.mubr.msk.bf16.gmra.mrb[52].mxu0 %vm165_vm1, %v72_v27  ;;  %v3112_v27 = vld [vmem:[%s5259_s5 + $0x78] ss:$28 sps:$4 sm:$0xff]  }
  0x87   :  { %393 = vmatprep.mubr.bf16.mxu0 %v3245_v1 }
  0x8e   :  { %2742 = vmatmul.mubr.msk.bf16.gmra.mrb[56].mxu0 %vm165_vm1, %v73_v30 }
  0x8f   :  { %403 = vmatprep.mubr.bf16.mxu0 %v3245_v1  ;;  %v90_v1 = vlaneseq }
  0x91   :  { %v3561_v38 = vshrl.u32 %v90_v1, 7  ;;  %v3121_v1 = vld [vmem:[%s5259_s5 + $0x1c0] ss:$28 sps:$4 sm:$0xff]  }
  0x92   :  { %1761 = vmatpush1.bf16.msra.mxu0 %v3121_v1 }
  0x93   :  { %v3567_v40 = vsub.s32 0, %v3561_v38  ;;  %v3570_v41 = vsub.s32 1, %v3561_v38 }
  0x95   :  { %v3579_v44 = vrot.slane %v88_v39, %v3567_v40  ;;  %v3582_v45 = vrot.slane %v88_v39, %v3570_v41  ;;  %v3129_v39 = vld [vmem:[%s5259_s5 + $0x1fc] ss:$28 sps:$4 sm:$0xff]  }
  0x96   :  { %2743 = vmatmul.mubr.msk.bf16.gmra.mrb[60].mxu0 %vm165_vm1, %v74_v33  ;;  %1762 = vmatprep.subr.bf16.mxu0 %v3129_v39  ;;  %v3163_v39 = vld [vmem:[%s5259_s5 + $0x310] ss:$28 sps:$4 sm:$0xff]  }
  0xf1   :  { %v255_v46 = vpop.f32.mrb[0].mxu0 }
  0xf2   :  { %v256_v49 = vadd.f32 %v255_v46, %v3579_v44  ;;  %v257_v50 = vpop.f32.mrb[1].mxu0  ;;  %v3126_v46 = vld [vmem:[%s5259_s5 + $0xec] ss:$28 sps:$4 sm:$0xff]  }
  0xf3   :  { %v258_v51 = vadd.f32 %v257_v50, %v3582_v45  ;;  %v259_v52 = vpop.f32.mrb[2].mxu0  ;;  %v3127_v50 = vld [vmem:[%s5259_s5 + $0x1f8] ss:$28 sps:$4 sm:$0xff]  }
  0xf4   :  { %v260_v53 = vadd.f32 %v259_v52, %v3579_v44  ;;  %v261_v54 = vpop.f32.mrb[3].mxu0  ;;  %v414_v59 = vmax.f32 %v256_v49, 0.0  ;;  %1763 = vmatpush1.bf16.msra.mxu0 %v3127_v50 }
  0xf5   :  { %v262_v57 = vadd.f32 %v261_v54, %v3582_v45  ;;  %v415_v62 = vmax.f32 %v258_v51, 0.0  ;;  %v3135_v54 = vld [vmem:[%s5259_s5 + $0x234] ss:$28 sps:$4 sm:$0xff]  }
  0xf6   :  { %v416_v60 = vmax.f32 %v260_v53, 0.0  ;;  %v3124_v53 = vld [vmem:[%s5259_s5 + $0xe8] ss:$28 sps:$4 sm:$0xff]   ;;  %1764 = vmatprep.subr.bf16.mxu0 %v3135_v54 }
  0xf7   :  { %v417_v63 = vmax.f32 %v262_v57, 0.0  ;;  %v3132_v57 = vld [vmem:[%s5259_s5 + $0x124] ss:$28 sps:$4 sm:$0xff]  }
  0xf8   :  { %v478_v0 = vpack.c.bf16 %v416_v60, %v414_v59  ;;  %v3130_v60 = vld [vmem:[%s5259_s5 + $0x120] ss:$28 sps:$4 sm:$0xff]   ;;  %1765 = vmatpush1.bf16.msra.mxu0 %v3133_v61  ;;  %v3162_v61 = vld [vmem:[%s5259_s5 + $0x274] ss:$28 sps:$4 sm:$0xff]  }
  0xf9   :  { %v265_v3 = vpop.f32.mrb[4].mxu0  ;;  %v479_v4 = vpack.c.bf16 %v417_v63, %v415_v62  ;;  %v3141_v62 = vld [vmem:[%s5259_s5 + $0x26c] ss:$28 sps:$4 sm:$0xff]  }
  0xfa   :  { %v266_v7 = vadd.f32 %v265_v3, %v3579_v44  ;;  %v267_v8 = vpop.f32.mrb[5].mxu0  ;;  %v3138_v3 = vld [vmem:[%s5259_s5 + $0x15c] ss:$28 sps:$4 sm:$0xff]   ;;  %1766 = vmatprep.subr.bf16.mxu0 %v3141_v62 }
  0xfb   :  { %v268_v10 = vadd.f32 %v267_v8, %v3582_v45  ;;  %v269_v11 = vpop.f32.mrb[6].mxu0  ;;  %746 = vmatprep.mubr.bf16.mxu1 %v479_v4 }
  0xfc   :  { %v270_v12 = vadd.f32 %v269_v11, %v3579_v44  ;;  %v271_v13 = vpop.f32.mrb[7].mxu0  ;;  %747 = vmatmul.mubr.bf16.vlgmr.msra.gmra.mrb[0].mxu1 %v478_v0  ;;  %v418_v18 = vmax.f32 %v266_v7, 0.0  ;;  %v3139_v7 = vld [vmem:[%s5259_s5 + $0x268] ss:$28 sps:$4 sm:$0xff]  }
  0xfd   :  { %v272_v15 = vadd.f32 %v271_v13, %v3582_v45  ;;  %1938 = vmatpush1.bf16.msra.mxu1 %v3100_v5  ;;  %v419_v21 = vmax.f32 %v268_v10, 0.0  ;;  %v3147_v10 = vld [vmem:[%s5259_s5 + $0x2a4] ss:$28 sps:$4 sm:$0xff]   ;;  %1767 = vmatpush1.bf16.msra.mxu0 %v3139_v7  ;;  %v3168_v7 = vld [vmem:[%s5259_s5 + $0x2ac] ss:$28 sps:$4 sm:$0xff]  }
  0xfe   :  { %v420_v19 = vmax.f32 %v270_v12, 0.0  ;;  %1939 = vmatprep.subr.bf16.mxu1 %v3108_v9  ;;  %v3136_v9 = vld [vmem:[%s5259_s5 + $0x158] ss:$28 sps:$4 sm:$0xff]   ;;  %1768 = vmatprep.subr.bf16.mxu0 %v3147_v10 }
  0xff   :  { %v421_v22 = vmax.f32 %v272_v15, 0.0  ;;  %v3144_v12 = vld [vmem:[%s5259_s5 + $0x194] ss:$28 sps:$4 sm:$0xff]  }
 0x100   :  { %v480_v23 = vpack.c.bf16 %v420_v19, %v418_v18 }
 0x101   :  { %v481_v25 = vpack.c.bf16 %v421_v22, %v419_v21  ;;  %v275_v26 = vpop.f32.mrb[8].mxu0  ;;  %1940 = vmatpush1.bf16.msra.mxu1 %v3106_v16  ;;  %v3156_v21 = vld [vmem:[%s5259_s5 + $0x2dc] ss:$28 sps:$4 sm:$0xff]   ;;  %1769 = vmatpush1.bf16.msra.mxu0 %v3145_v17 }
 0x102   :  { %v276_v29 = vadd.f32 %v275_v26, %v3579_v44  ;;  %v277_v30 = vpop.f32.mrb[9].mxu0  ;;  %1941 = vmatprep.subr.bf16.mxu1 %v3114_v20  ;;  %v3142_v20 = vld [vmem:[%s5259_s5 + $0x190] ss:$28 sps:$4 sm:$0xff]   ;;  %1770 = vmatprep.subr.bf16.mxu0 %v3156_v21 }
 0x103   :  { %v278_v32 = vadd.f32 %v277_v30, %v3582_v45  ;;  %v279_v33 = vpop.f32.mrb[10].mxu0  ;;  %756 = vmatprep.mubr.bf16.mxu1 %v481_v25 }
 0x104   :  { %v280_v34 = vadd.f32 %v279_v33, %v3579_v44  ;;  %v281_v35 = vpop.f32.mrb[11].mxu0  ;;  %757 = vmatmul.mubr.bf16.gmra.mrb[4].mxu1 %v480_v23  ;;  %v422_v42 = vmax.f32 %v276_v29, 0.0 }
 0x105   :  { %v282_v36 = vadd.f32 %v281_v35, %v3582_v45  ;;  %1942 = vmatpush1.bf16.msra.mxu1 %v3112_v27  ;;  %v423_v47 = vmax.f32 %v278_v32, 0.0  ;;  %v3165_v32 = vld [vmem:[%s5259_s5 + $0x314] ss:$28 sps:$4 sm:$0xff]   ;;  %1771 = vmatpush1.bf16.msra.mxu0 %v3154_v28 }
 0x106   :  { %v424_v43 = vmax.f32 %v280_v34, 0.0  ;;  %1943 = vmatprep.subr.bf16.mxu1 %v3120_v31  ;;  %v3148_v31 = vld [vmem:[%s5259_s5 + $0x1c8] ss:$28 sps:$4 sm:$0xff]   ;;  %1772 = vmatprep.subr.bf16.mxu0 %v3165_v32 }
 0x107   :  { %v425_v48 = vmax.f32 %v282_v36, 0.0  ;;  %v3153_v34 = vld [vmem:[%s5259_s5 + $0x204] ss:$28 sps:$4 sm:$0xff]  }
 0x108   :  { %v482_v49 = vpack.c.bf16 %v424_v43, %v422_v42 }
 0x109   :  { %v483_v51 = vpack.c.bf16 %v425_v48, %v423_v47  ;;  %v285_v52 = vpop.f32.mrb[12].mxu0  ;;  %1944 = vmatpush1.bf16.msra.mxu1 %v3118_v37  ;;  %1773 = vmatpush1.bf16.msra.mxu0 %v3163_v39 }
 0x10a   :  { %v286_v55 = vadd.f32 %v285_v52, %v3579_v44  ;;  %v287_v56 = vpop.f32.mrb[13].mxu0  ;;  %1945 = vmatprep.subr.bf16.mxu1 %v3126_v46  ;;  %v3159_v52 = vld [vmem:[%s5259_s5 + $0x23c] ss:$28 sps:$4 sm:$0xff]  }
 0x10b   :  { %v288_v58 = vadd.f32 %v287_v56, %v3582_v45  ;;  %v289_v59 = vpop.f32.mrb[14].mxu0  ;;  %766 = vmatprep.mubr.bf16.mxu1 %v483_v51 }
 0x10c   :  { %v426_v63 = vmax.f32 %v286_v55, 0.0  ;;  %v290_v0 = vadd.f32 %v289_v59, %v3579_v44  ;;  %v291_v2 = vpop.f32.mrb[15].mxu0  ;;  %767 = vmatmul.mubr.bf16.gmra.mrb[8].mxu1 %v482_v49  ;;  %v3151_v49 = vld [vmem:[%s5259_s5 + $0x200] ss:$28 sps:$4 sm:$0xff]  }
 0x10d   :  { %v427_v4 = vmax.f32 %v288_v58, 0.0  ;;  %v292_v5 = vadd.f32 %v291_v2, %v3582_v45  ;;  %1946 = vmatpush1.bf16.msra.mxu1 %v3124_v53  ;;  %v3157_v58 = vld [vmem:[%s5259_s5 + $0x238] ss:$28 sps:$4 sm:$0xff]  }
 0x10e   :  { %v428_v6 = vmax.f32 %v290_v0, 0.0  ;;  %1947 = vmatprep.subr.bf16.mxu1 %v3132_v57 }
 0x10f   :  { %v429_v8 = vmax.f32 %v292_v5, 0.0 }
 0x110   :  { %v484_v11 = vpack.c.bf16 %v428_v6, %v426_v63 }
 0x111   :  { %v485_v13 = vpack.c.bf16 %v429_v8, %v427_v4  ;;  %v295_v14 = vpop.f32.mrb[16].mxu0  ;;  %1948 = vmatpush1.bf16.msra.mxu1 %v3130_v60  ;;  %v3160_v4 = vld [vmem:[%s5259_s5 + $0x270] ss:$28 sps:$4 sm:$0xff]  }
 0x112   :  { %v296_v15 = vadd.f32 %v295_v14, %v3579_v44  ;;  %v297_v16 = vpop.f32.mrb[17].mxu0  ;;  %1949 = vmatprep.subr.bf16.mxu1 %v3138_v3 }
 0x113   :  { %v298_v18 = vadd.f32 %v297_v16, %v3582_v45  ;;  %v299_v19 = vpop.f32.mrb[18].mxu0  ;;  %776 = vmatprep.mubr.bf16.mxu1 %v485_v13  ;;  %v3166_v13 = vld [vmem:[%s5259_s5 + $0x2a8] ss:$28 sps:$4 sm:$0xff]  }
 0x114   :  { %v300_v22 = vadd.f32 %v299_v19, %v3579_v44  ;;  %v301_v23 = vpop.f32.mrb[19].mxu0  ;;  %777 = vmatmul.mubr.bf16.gmra.mrb[12].mxu1 %v484_v11  ;;  %v430_v25 = vmax.f32 %v296_v15, 0.0  ;;  %v3171_v16 = vld [vmem:[%s5259_s5 + $0x2e4] ss:$28 sps:$4 sm:$0xff]  }
 0x115   :  { %v302_v26 = vadd.f32 %v301_v23, %v3582_v45  ;;  %1950 = vmatpush1.bf16.msra.mxu1 %v3136_v9  ;;  %v431_v29 = vmax.f32 %v298_v18, 0.0 }
 0x116   :  { %v432_v27 = vmax.f32 %v300_v22, 0.0  ;;  %1951 = vmatprep.subr.bf16.mxu1 %v3144_v12  ;;  %v3169_v22 = vld [vmem:[%s5259_s5 + $0x2e0] ss:$28 sps:$4 sm:$0xff]  }
 0x117   :  { %v433_v30 = vmax.f32 %v302_v26, 0.0 }
 0x118   :  { %v486_v33 = vpack.c.bf16 %v432_v27, %v430_v25 }
 0x119   :  { %v487_v35 = vpack.c.bf16 %v433_v30, %v431_v29  ;;  %v305_v1 = vpop.f32.mrb[20].mxu0  ;;  %1952 = vmatpush1.bf16.msra.mxu1 %v3142_v20 }
 0x11a   :  { %v306_v36 = vadd.f32 %v305_v1, %v3579_v44  ;;  %v307_v37 = vpop.f32.mrb[21].mxu0  ;;  %1953 = vmatprep.subr.bf16.mxu1 %v3150_v24 }
 0x11b   :  { %v308_v42 = vadd.f32 %v307_v37, %v3582_v45  ;;  %v309_v43 = vpop.f32.mrb[22].mxu0  ;;  %786 = vmatprep.mubr.bf16.mxu1 %v487_v35 }
 0x11c   :  { %v310_v46 = vadd.f32 %v309_v43, %v3579_v44  ;;  %v311_v47 = vpop.f32.mrb[23].mxu0  ;;  %787 = vmatmul.mubr.bf16.gmra.mrb[16].mxu1 %v486_v33  ;;  %v434_v50 = vmax.f32 %v306_v36, 0.0 }
 0x11d   :  { %v312_v48 = vadd.f32 %v311_v47, %v3582_v45  ;;  %1954 = vmatpush1.bf16.msra.mxu1 %v3148_v31  ;;  %v435_v53 = vmax.f32 %v308_v42, 0.0 }
 0x11e   :  { %v436_v51 = vmax.f32 %v310_v46, 0.0  ;;  %1955 = vmatprep.subr.bf16.mxu1 %v3153_v34 }
 0x11f   :  { %v437_v54 = vmax.f32 %v312_v48, 0.0 }
 0x120   :  { %v488_v55 = vpack.c.bf16 %v436_v51, %v434_v50 }
 0x121   :  { %v489_v56 = vpack.c.bf16 %v437_v54, %v435_v53  ;;  %v315_v57 = vpop.f32.mrb[24].mxu0  ;;  %1956 = vmatpush1.bf16.msra.mxu1 %v3151_v49 }
 0x122   :  { %v316_v59 = vadd.f32 %v315_v57, %v3579_v44  ;;  %v317_v60 = vpop.f32.mrb[25].mxu0  ;;  %1957 = vmatprep.subr.bf16.mxu1 %v3159_v52 }
 0x123   :  { %v318_v62 = vadd.f32 %v317_v60, %v3582_v45  ;;  %v319_v63 = vpop.f32.mrb[26].mxu0  ;;  %796 = vmatprep.mubr.bf16.mxu1 %v489_v56 }
 0x124   :  { %v320_v0 = vadd.f32 %v319_v63, %v3579_v44  ;;  %v321_v2 = vpop.f32.mrb[27].mxu0  ;;  %797 = vmatmul.mubr.bf16.gmra.mrb[20].mxu1 %v488_v55  ;;  %v438_v5 = vmax.f32 %v316_v59, 0.0 }
 0x125   :  { %v322_v3 = vadd.f32 %v321_v2, %v3582_v45  ;;  %1958 = vmatpush1.bf16.msra.mxu1 %v3157_v58  ;;  %v439_v8 = vmax.f32 %v318_v62, 0.0 }
 0x126   :  { %v440_v6 = vmax.f32 %v320_v0, 0.0  ;;  %1959 = vmatprep.subr.bf16.mxu1 %v3162_v61 }
 0x127   :  { %v441_v9 = vmax.f32 %v322_v3, 0.0 }
 0x128   :  { %v490_v10 = vpack.c.bf16 %v440_v6, %v438_v5 }
 0x129   :  { %v491_v11 = vpack.c.bf16 %v441_v9, %v439_v8  ;;  %v325_v12 = vpop.f32.mrb[28].mxu0  ;;  %1960 = vmatpush1.bf16.msra.mxu1 %v3160_v4 }
 0x12a   :  { %v326_v14 = vadd.f32 %v325_v12, %v3579_v44  ;;  %v327_v15 = vpop.f32.mrb[29].mxu0  ;;  %1961 = vmatprep.subr.bf16.mxu1 %v3168_v7 }
 0x12b   :  { %v328_v17 = vadd.f32 %v327_v15, %v3582_v45  ;;  %v329_v18 = vpop.f32.mrb[30].mxu0  ;;  %806 = vmatprep.mubr.bf16.mxu1 %v491_v11 }
 0x12c   :  { %v330_v19 = vadd.f32 %v329_v18, %v3579_v44  ;;  %v331_v20 = vpop.f32.mrb[31].mxu0  ;;  %807 = vmatmul.mubr.bf16.gmra.mrb[24].mxu1 %v490_v10  ;;  %v442_v23 = vmax.f32 %v326_v14, 0.0 }
 0x12d   :  { %v332_v21 = vadd.f32 %v331_v20, %v3582_v45  ;;  %1962 = vmatpush1.bf16.msra.mxu1 %v3166_v13  ;;  %v443_v25 = vmax.f32 %v328_v17, 0.0 }
 0x12e   :  { %v444_v24 = vmax.f32 %v330_v19, 0.0  ;;  %1963 = vmatprep.subr.bf16.mxu1 %v3171_v16 }
 0x12f   :  { %v445_v26 = vmax.f32 %v332_v21, 0.0 }
 0x130   :  { %v492_v27 = vpack.c.bf16 %v444_v24, %v442_v23 }
 0x131   :  { %v493_v28 = vpack.c.bf16 %v445_v26, %v443_v25  ;;  %v335_v29 = vpop.f32.mrb[32].mxu0  ;;  %1964 = vmatpush1.bf16.msra.mxu1 %v3169_v22  ;;  %v3177_v25 = vld [vmem:[%s5259_s5 + $0x31c] ss:$28 sps:$4 sm:$0xff]  }
 0x132   :  { %v336_v30 = vadd.f32 %v335_v29, %v3579_v44  ;;  %v337_v31 = vpop.f32.mrb[33].mxu0  ;;  %1965 = vmatprep.subr.bf16.mxu1 %v3177_v25 }
 0x133   :  { %v338_v32 = vadd.f32 %v337_v31, %v3582_v45  ;;  %v339_v33 = vpop.f32.mrb[34].mxu0  ;;  %816 = vmatprep.mubr.bf16.mxu1 %v493_v28  ;;  %v3175_v28 = vld [vmem:[%s5259_s5 + $0x318] ss:$28 sps:$4 sm:$0xff]  }
 0x134   :  { %v340_v34 = vadd.f32 %v339_v33, %v3579_v44  ;;  %v341_v35 = vpop.f32.mrb[35].mxu0  ;;  %817 = vmatmul.mubr.bf16.gmra.mrb[28].mxu1 %v492_v27  ;;  %v446_v36 = vmax.f32 %v336_v30, 0.0 }
 0x135   :  { %v342_v1 = vadd.f32 %v341_v35, %v3582_v45  ;;  %v447_v39 = vmax.f32 %v338_v32, 0.0  ;;  %1966 = vmatpush1.bf16.msra.mxu1 %v3175_v28  ;;  %v3174_v35 = vld [vmem:[%s5259_s5 + $0x34c] ss:$28 sps:$4 sm:$0xff]  }
 0x136   :  { %v448_v37 = vmax.f32 %v340_v34, 0.0  ;;  %1774 = vmatprep.subr.bf16.mxu0 %v3174_v35 }
 0x137   :  { %v449_v42 = vmax.f32 %v342_v1, 0.0  ;;  %v3180_v1 = vld [vmem:[%s5259_s5 + $0x354] ss:$28 sps:$4 sm:$0xff]  }
 0x138   :  { %v494_v43 = vpack.c.bf16 %v448_v37, %v446_v36  ;;  %v3172_v37 = vld [vmem:[%s5259_s5 + $0x348] ss:$28 sps:$4 sm:$0xff]   ;;  %1967 = vmatprep.subr.bf16.mxu1 %v3180_v1 }
 0x139   :  { %v495_v46 = vpack.c.bf16 %v449_v42, %v447_v39  ;;  %v345_v47 = vpop.f32.mrb[36].mxu0  ;;  %v3178_v39 = vld [vmem:[%s5259_s5 + $0x350] ss:$28 sps:$4 sm:$0xff]   ;;  %1775 = vmatpush1.bf16.msra.mxu0 %v3172_v37 }
 0x13a   :  { %v346_v48 = vadd.f32 %v345_v47, %v3579_v44  ;;  %v347_v49 = vpop.f32.mrb[37].mxu0  ;;  %1968 = vmatpush1.bf16.msra.mxu1 %v3178_v39 }
 0x13b   :  { %v348_v50 = vadd.f32 %v347_v49, %v3582_v45  ;;  %v349_v51 = vpop.f32.mrb[38].mxu0  ;;  %826 = vmatprep.mubr.bf16.mxu1 %v495_v46 }
 0x13c   :  { %v350_v52 = vadd.f32 %v349_v51, %v3579_v44  ;;  %v351_v53 = vpop.f32.mrb[39].mxu0  ;;  %827 = vmatmul.mubr.bf16.gmra.mrb[32].mxu1 %v494_v43  ;;  %v450_v55 = vmax.f32 %v346_v48, 0.0 }
 0x13d   :  { %v352_v54 = vadd.f32 %v351_v53, %v3582_v45  ;;  %v451_v57 = vmax.f32 %v348_v50, 0.0 }
 0x13e   :  { %v452_v56 = vmax.f32 %v350_v52, 0.0 }
 0x13f   :  { %v453_v58 = vmax.f32 %v352_v54, 0.0 }
 0x140   :  { %v496_v59 = vpack.c.bf16 %v452_v56, %v450_v55 }
 0x141   :  { %v497_v60 = vpack.c.bf16 %v453_v58, %v451_v57  ;;  %v355_v61 = vpop.f32.mrb[40].mxu0 }
 0x142   :  { %v356_v62 = vadd.f32 %v355_v61, %v3579_v44  ;;  %v357_v63 = vpop.f32.mrb[41].mxu0 }
 0x143   :  { %v358_v0 = vadd.f32 %v357_v63, %v3582_v45  ;;  %v359_v2 = vpop.f32.mrb[42].mxu0  ;;  %836 = vmatprep.mubr.bf16.mxu1 %v497_v60  ;;  %v3183_v60 = vld [vmem:[%s5259_s5 + $0x14] ss:$28 sps:$4 sm:$0xff]  }
 0x144   :  { %v360_v3 = vadd.f32 %v359_v2, %v3579_v44  ;;  %v361_v4 = vpop.f32.mrb[43].mxu0  ;;  %837 = vmatmul.mubr.bf16.gmra.mrb[36].mxu1 %v496_v59  ;;  %v454_v6 = vmax.f32 %v356_v62, 0.0  ;;  %2130 = vmatprep.subr.bf16.mxu0 %v3183_v60 }
 0x145   :  { %v362_v5 = vadd.f32 %v361_v4, %v3582_v45  ;;  %v455_v8 = vmax.f32 %v358_v0, 0.0 }
 0x146   :  { %v456_v7 = vmax.f32 %v360_v3, 0.0 }
 0x147   :  { %v457_v9 = vmax.f32 %v362_v5, 0.0 }
 0x148   :  { %v498_v10 = vpack.c.bf16 %v456_v7, %v454_v6 }
 0x149   :  { %v499_v11 = vpack.c.bf16 %v457_v9, %v455_v8  ;;  %v365_v12 = vpop.f32.mrb[44].mxu0 }
 0x14a   :  { %v366_v13 = vadd.f32 %v365_v12, %v3579_v44  ;;  %v367_v14 = vpop.f32.mrb[45].mxu0 }
 0x14b   :  { %v368_v15 = vadd.f32 %v367_v14, %v3582_v45  ;;  %v369_v16 = vpop.f32.mrb[46].mxu0  ;;  %846 = vmatprep.mubr.bf16.mxu1 %v499_v11 }
 0x14c   :  { %v370_v17 = vadd.f32 %v369_v16, %v3579_v44  ;;  %v371_v18 = vpop.f32.mrb[47].mxu0  ;;  %847 = vmatmul.mubr.bf16.gmra.mrb[40].mxu1 %v498_v10  ;;  %v458_v20 = vmax.f32 %v366_v13, 0.0 }
 0x14d   :  { %v372_v19 = vadd.f32 %v371_v18, %v3582_v45  ;;  %v459_v22 = vmax.f32 %v368_v15, 0.0 }
 0x14e   :  { %v460_v21 = vmax.f32 %v370_v17, 0.0 }
 0x14f   :  { %v461_v23 = vmax.f32 %v372_v19, 0.0 }
 0x150   :  { %v500_v24 = vpack.c.bf16 %v460_v21, %v458_v20 }
 0x151   :  { %v501_v26 = vpack.c.bf16 %v461_v23, %v459_v22  ;;  %v375_v27 = vpop.f32.mrb[48].mxu0 }
 0x152   :  { %v376_v29 = vadd.f32 %v375_v27, %v3579_v44  ;;  %v377_v30 = vpop.f32.mrb[49].mxu0 }
 0x153   :  { %v378_v31 = vadd.f32 %v377_v30, %v3582_v45  ;;  %v379_v32 = vpop.f32.mrb[50].mxu0  ;;  %856 = vmatprep.mubr.bf16.mxu1 %v501_v26  ;;  %v3828_v30 = vld [vmem:[%s5259_s5 + $0x1d8] ss:$28 sps:$4 sm:$0xff]  }
 0x154   :  { %v380_v33 = vadd.f32 %v379_v32, %v3579_v44  ;;  %v381_v34 = vpop.f32.mrb[51].mxu0  ;;  %857 = vmatmul.mubr.bf16.gmra.mrb[44].mxu1 %v500_v24  ;;  %v462_v42 = vmax.f32 %v376_v29, 0.0  ;;  %3000 = vmatprep.subr.bf16.mxu1 %v3828_v30 }
 0x155   :  { %v382_v36 = vadd.f32 %v381_v34, %v3582_v45  ;;  %v463_v46 = vmax.f32 %v378_v31, 0.0 }
 0x156   :  { %v464_v43 = vmax.f32 %v380_v33, 0.0 }
 0x157   :  { %v465_v47 = vmax.f32 %v382_v36, 0.0 }
 0x158   :  { %v502_v48 = vpack.c.bf16 %v464_v43, %v462_v42 }
 0x159   :  { %v503_v49 = vpack.c.bf16 %v465_v47, %v463_v46  ;;  %v385_v50 = vpop.f32.mrb[52].mxu0 }
 0x15a   :  { %v386_v51 = vadd.f32 %v385_v50, %v3579_v44  ;;  %v387_v52 = vpop.f32.mrb[53].mxu0 }
 0x15b   :  { %v388_v53 = vadd.f32 %v387_v52, %v3582_v45  ;;  %v389_v54 = vpop.f32.mrb[54].mxu0  ;;  %866 = vmatprep.mubr.bf16.mxu1 %v503_v49  ;;  %v3854_v52 = vld [vmem:[%s5259_s5 + $0x18] ss:$28 sps:$4 sm:$0xff]  }
 0x15c   :  { %v390_v55 = vadd.f32 %v389_v54, %v3579_v44  ;;  %v391_v56 = vpop.f32.mrb[55].mxu0  ;;  %867 = vmatmul.mubr.bf16.gmra.mrb[48].mxu1 %v502_v48  ;;  %v466_v58 = vmax.f32 %v386_v51, 0.0  ;;  %v3181_v51 = vld [vmem:[%s5259_s5 + $0x10] ss:$28 sps:$4 sm:$0xff]  }
 0x15d   :  { %v392_v57 = vadd.f32 %v391_v56, %v3582_v45  ;;  %v467_v61 = vmax.f32 %v388_v53, 0.0  ;;  %v3863_v56 = vld [vmem:[%s5259_s5 + $0x210] ss:$28 sps:$4 sm:$0xff]  }
 0x15e   :  { %v468_v59 = vmax.f32 %v390_v55, 0.0  ;;  %v3186_v55 = vld [vmem:[%s5259_s5 + $0x4c] ss:$28 sps:$4 sm:$0xff]  }
 0x15f   :  { %v469_v62 = vmax.f32 %v392_v57, 0.0 }
 0x160   :  { %v504_v63 = vpack.c.bf16 %v468_v59, %v466_v58 }
 0x161   :  { %v505_v0 = vpack.c.bf16 %v469_v62, %v467_v61  ;;  %v395_v2 = vpop.f32.mrb[56].mxu0  ;;  %v3184_v62 = vld [vmem:[%s5259_s5 + $0x48] ss:$28 sps:$4 sm:$0xff]  }
 0x162   :  { %v396_v3 = vadd.f32 %v395_v2, %v3579_v44  ;;  %v397_v4 = vpop.f32.mrb[57].mxu0 }
 0x163   :  { %v398_v5 = vadd.f32 %v397_v4, %v3582_v45  ;;  %v399_v6 = vpop.f32.mrb[58].mxu0  ;;  %876 = vmatprep.mubr.bf16.mxu1 %v505_v0  ;;  %v3888_v4 = vld [vmem:[%s5259_s5 + $0x248] ss:$28 sps:$4 sm:$0xff]  }
 0x164   :  { %v400_v7 = vadd.f32 %v399_v6, %v3579_v44  ;;  %v401_v8 = vpop.f32.mrb[59].mxu0  ;;  %877 = vmatmul.mubr.bf16.gmra.mrb[52].mxu1 %v504_v63  ;;  %v470_v10 = vmax.f32 %v396_v3, 0.0  ;;  %v3879_v63 = vld [vmem:[%s5259_s5 + $0x50] ss:$28 sps:$4 sm:$0xff]   ;;  %v3189_v3 = vld [vmem:[%s5259_s5 + $0x84] ss:$28 sps:$4 sm:$0xff]  }
 0x165   :  { %v402_v9 = vadd.f32 %v401_v8, %v3582_v45  ;;  %v471_v12 = vmax.f32 %v398_v5, 0.0 }
 0x166   :  { %v472_v11 = vmax.f32 %v400_v7, 0.0 }
 0x167   :  { %v473_v13 = vmax.f32 %v402_v9, 0.0 }
 0x168   :  { %v506_v14 = vpack.c.bf16 %v472_v11, %v470_v10  ;;  %v3187_v10 = vld [vmem:[%s5259_s5 + $0x80] ss:$28 sps:$4 sm:$0xff]   ;;  %v3901_v11 = vld [vmem:[%s5259_s5 + $0x88] ss:$28 sps:$4 sm:$0xff]  }
 0x169   :  { %v507_v15 = vpack.c.bf16 %v473_v13, %v471_v12  ;;  %v405_v16 = vpop.f32.mrb[60].mxu0 }
 0x16a   :  { %v406_v17 = vadd.f32 %v405_v16, %v3579_v44  ;;  %v407_v18 = vpop.f32.mrb[61].mxu0 }
 0x16b   :  { %v408_v19 = vadd.f32 %v407_v18, %v3582_v45  ;;  %v409_v20 = vpop.f32.mrb[62].mxu0  ;;  %886 = vmatprep.mubr.bf16.mxu1 %v507_v15  ;;  %v3911_v15 = vld [vmem:[%s5259_s5 + $0x280] ss:$28 sps:$4 sm:$0xff]  }
 0x16c   :  { %v410_v21 = vadd.f32 %v409_v20, %v3579_v44  ;;  %v411_v22 = vpop.f32.mrb[63].mxu0  ;;  %887 = vmatmul.mubr.bf16.gmra.mrb[56].mxu1 %v506_v14  ;;  %v474_v24 = vmax.f32 %v406_v17, 0.0  ;;  %v542_v44 = vld [vmem:[%s5261_s4] sm:$0x3]  ;;  %v3192_v14 = vld [vmem:[%s5259_s5 + $0xbc] ss:$28 sps:$4 sm:$0xff]  }
 0x16d   :  { %v412_v23 = vadd.f32 %v411_v22, %v3582_v45  ;;  %v475_v26 = vmax.f32 %v408_v19, 0.0  ;;  %v3835_v45 = vrot.slane %v542_v44, %v3567_v40  ;;  %v3838_v31 = vrot.slane %v542_v44, %v3570_v41  ;;  %v3927_v22 = vld [vmem:[%s5259_s5 + $0xc0] ss:$28 sps:$4 sm:$0xff]  }
 0x16e   :  { %v476_v25 = vmax.f32 %v410_v21, 0.0  ;;  %v3190_v21 = vld [vmem:[%s5259_s5 + $0xb8] ss:$28 sps:$4 sm:$0xff]  }
 0x16f   :  { %v477_v27 = vmax.f32 %v412_v23, 0.0 }
 0x170   :  { %v508_v28 = vpack.c.bf16 %v476_v25, %v474_v24  ;;  %v3195_v25 = vld [vmem:[%s5259_s5 + $0xf4] ss:$28 sps:$4 sm:$0xff]  }
 0x171   :  { %v509_v29 = vpack.c.bf16 %v477_v27, %v475_v26  ;;  %v3936_v26 = vld [vmem:[%s5259_s5 + $0x2b8] ss:$28 sps:$4 sm:$0xff]  }
 0x173   :  { %896 = vmatprep.mubr.bf16.mxu1 %v509_v29 }
 0x174   :  { %897 = vmatmul.mubr.bf16.gmra.mrb[60].mxu1 %v508_v28 }
 0x1cf   :  { %v748_v32 = vpop.f32.mrb[0].mxu1 }
 0x1d0   :  { %v749_v33 = vadd.f32 %v748_v32, %v3835_v45  ;;  %v750_v34 = vpop.f32.mrb[1].mxu1 }
 0x1d1   :  { %v751_v35 = vadd.f32 %v750_v34, %v3838_v31  ;;  %v752_v1 = vpop.f32.mrb[2].mxu1  ;;  %v3949_v34 = vld [vmem:[%s5259_s5 + $0xf8] ss:$28 sps:$4 sm:$0xff]  }
 0x1d2   :  { %v753_v36 = vadd.f32 %v752_v1, %v3835_v45  ;;  %v754_v37 = vpop.f32.mrb[3].mxu1  ;;  %v907_v42 = vmax.f32 %v749_v33, 0.0  ;;  %v3193_v33 = vld [vmem:[%s5259_s5 + $0xf0] ss:$28 sps:$4 sm:$0xff]  }
 0x1d3   :  { %v755_v39 = vadd.f32 %v754_v37, %v3838_v31  ;;  %v908_v46 = vmax.f32 %v751_v35, 0.0  ;;  %v3959_v37 = vld [vmem:[%s5259_s5 + $0x2f0] ss:$28 sps:$4 sm:$0xff]  }
 0x1d4   :  { %v909_v43 = vmax.f32 %v753_v36, 0.0  ;;  %v3200_v36 = vld [vmem:[%s5259_s5 + $0x12c] ss:$28 sps:$4 sm:$0xff]  }
 0x1d5   :  { %v910_v47 = vmax.f32 %v755_v39, 0.0 }
 0x1d6   :  { %v3844_v48 = vpack.c.bf16 %v909_v43, %v907_v42 }
 0x1d7   :  { %v3846_v49 = vpack.c.bf16 %v910_v47, %v908_v46  ;;  %v758_v50 = vpop.f32.mrb[4].mxu1 }
 0x1d8   :  { %v759_v53 = vadd.f32 %v758_v50, %v3835_v45  ;;  %v760_v54 = vpop.f32.mrb[5].mxu1  ;;  %v3198_v50 = vld [vmem:[%s5259_s5 + $0x128] ss:$28 sps:$4 sm:$0xff]  }
 0x1d9   :  { %v761_v57 = vadd.f32 %v760_v54, %v3838_v31  ;;  %v762_v58 = vpop.f32.mrb[6].mxu1  ;;  %1776 = vmatprep.mubr.bf16.mxu0 %v3846_v49  ;;  %1969 = vmatprep.mubr.bf16.mxu1 %v3846_v49 }
 0x1da   :  { %v763_v59 = vadd.f32 %v762_v58, %v3835_v45  ;;  %v764_v60 = vpop.f32.mrb[7].mxu1  ;;  %1777 = vmatmul.mubr.bf16.vlgmr.msra.gmra.mrb[64].mxu0 %v3844_v48  ;;  %1970 = vmatmul.mubr.bf16.vlgmr.msra.gmra.mrb[64].mxu1 %v3844_v48  ;;  %v911_v0 = vmax.f32 %v759_v53, 0.0 }
 0x1db   :  { %v765_v61 = vadd.f32 %v764_v60, %v3838_v31  ;;  %2131 = vmatpush1.bf16.msra.mxu0 %v3181_v51  ;;  %3008 = vmatpush3.bf16.msra.mxu1 %v3854_v52  ;;  %v912_v5 = vmax.f32 %v761_v57, 0.0  ;;  %v3975_v51 = vld [vmem:[%s5259_s5 + $0x130] ss:$28 sps:$4 sm:$0xff]   ;;  %v3984_v57 = vld [vmem:[%s5259_s5 + $0x328] ss:$28 sps:$4 sm:$0xff]  }
 0x1dc   :  { %v913_v2 = vmax.f32 %v763_v59, 0.0  ;;  %2132 = vmatprep.subr.bf16.mxu0 %v3186_v55  ;;  %3001 = vmatprep.subr.bf16.mxu1 %v3863_v56  ;;  %v3203_v55 = vld [vmem:[%s5259_s5 + $0x164] ss:$28 sps:$4 sm:$0xff]  }
 0x1dd   :  { %v914_v6 = vmax.f32 %v765_v61, 0.0 }
 0x1de   :  { %v3890_v7 = vpack.c.bf16 %v913_v2, %v911_v0  ;;  %v3201_v0 = vld [vmem:[%s5259_s5 + $0x160] ss:$28 sps:$4 sm:$0xff]   ;;  %v3997_v2 = vld [vmem:[%s5259_s5 + $0x168] ss:$28 sps:$4 sm:$0xff]  }
 0x1df   :  { %v3892_v8 = vpack.c.bf16 %v914_v6, %v912_v5  ;;  %v768_v9 = vpop.f32.mrb[8].mxu1  ;;  %2133 = vmatpush1.bf16.msra.mxu0 %v3184_v62  ;;  %3009 = vmatpush3.bf16.msra.mxu1 %v3879_v63  ;;  %v3208_v6 = vld [vmem:[%s5259_s5 + $0x19c] ss:$28 sps:$4 sm:$0xff]  }
 0x1e0   :  { %v769_v12 = vadd.f32 %v768_v9, %v3835_v45  ;;  %v770_v13 = vpop.f32.mrb[9].mxu1  ;;  %2134 = vmatprep.subr.bf16.mxu0 %v3189_v3  ;;  %3002 = vmatprep.subr.bf16.mxu1 %v3888_v4  ;;  %v4007_v9 = vld [vmem:[%s5259_s5 + $0x360] ss:$28 sps:$4 sm:$0xff]  }
 0x1e1   :  { %v771_v16 = vadd.f32 %v770_v13, %v3838_v31  ;;  %v772_v17 = vpop.f32.mrb[10].mxu1  ;;  %1786 = vmatprep.mubr.bf16.mxu0 %v3892_v8  ;;  %1979 = vmatprep.mubr.bf16.mxu1 %v3892_v8 }
 0x1e2   :  { %v773_v18 = vadd.f32 %v772_v17, %v3835_v45  ;;  %v774_v19 = vpop.f32.mrb[11].mxu1  ;;  %1787 = vmatmul.mubr.bf16.gmra.mrb[68].mxu0 %v3890_v7  ;;  %1980 = vmatmul.mubr.bf16.gmra.mrb[68].mxu1 %v3890_v7  ;;  %v915_v23 = vmax.f32 %v769_v12, 0.0  ;;  %v3206_v17 = vld [vmem:[%s5259_s5 + $0x198] ss:$28 sps:$4 sm:$0xff]  }
 0x1e3   :  { %v775_v20 = vadd.f32 %v774_v19, %v3838_v31  ;;  %2135 = vmatpush1.bf16.msra.mxu0 %v3187_v10  ;;  %3010 = vmatpush3.bf16.msra.mxu1 %v3901_v11  ;;  %v916_v27 = vmax.f32 %v771_v16, 0.0 }
 0x1e4   :  { %v917_v24 = vmax.f32 %v773_v18, 0.0  ;;  %2136 = vmatprep.subr.bf16.mxu0 %v3192_v14  ;;  %3003 = vmatprep.subr.bf16.mxu1 %v3911_v15  ;;  %v4023_v18 = vld [vmem:[%s5259_s5 + $0x1a0] ss:$28 sps:$4 sm:$0xff]  }
 0x1e5   :  { %v918_v28 = vmax.f32 %v775_v20, 0.0 }
 0x1e6   :  { %v3938_v29 = vpack.c.bf16 %v917_v24, %v915_v23 }
 0x1e7   :  { %v3940_v44 = vpack.c.bf16 %v918_v28, %v916_v27  ;;  %v778_v32 = vpop.f32.mrb[12].mxu1  ;;  %2137 = vmatpush1.bf16.msra.mxu0 %v3190_v21  ;;  %3011 = vmatpush3.bf16.msra.mxu1 %v3927_v22  ;;  %v3211_v21 = vld [vmem:[%s5259_s5 + $0x1d4] ss:$28 sps:$4 sm:$0xff]  }
 0x1e8   :  { %v779_v35 = vadd.f32 %v778_v32, %v3835_v45  ;;  %v780_v1 = vpop.f32.mrb[13].mxu1  ;;  %2138 = vmatprep.subr.bf16.mxu0 %v3195_v25  ;;  %3004 = vmatprep.subr.bf16.mxu1 %v3936_v26  ;;  %v3209_v32 = vld [vmem:[%s5259_s5 + $0x1d0] ss:$28 sps:$4 sm:$0xff]  }
 0x1e9   :  { %v781_v39 = vadd.f32 %v780_v1, %v3838_v31  ;;  %v782_v42 = vpop.f32.mrb[14].mxu1  ;;  %1796 = vmatprep.mubr.bf16.mxu0 %v3940_v44  ;;  %1989 = vmatprep.mubr.bf16.mxu1 %v3940_v44  ;;  %v3216_v1 = vld [vmem:[%s5259_s5 + $0x20c] ss:$28 sps:$4 sm:$0xff]  }
 0x1ea   :  { %v783_v43 = vadd.f32 %v782_v42, %v3835_v45  ;;  %v784_v46 = vpop.f32.mrb[15].mxu1  ;;  %1797 = vmatmul.mubr.bf16.gmra.mrb[72].mxu0 %v3938_v29  ;;  %1990 = vmatmul.mubr.bf16.gmra.mrb[72].mxu1 %v3938_v29  ;;  %v919_v53 = vmax.f32 %v779_v35, 0.0 }
 0x1eb   :  { %v785_v47 = vadd.f32 %v784_v46, %v3838_v31  ;;  %2139 = vmatpush1.bf16.msra.mxu0 %v3193_v33  ;;  %3012 = vmatpush3.bf16.msra.mxu1 %v3949_v34  ;;  %v920_v58 = vmax.f32 %v781_v39, 0.0 }
 0x1ec   :  { %v921_v54 = vmax.f32 %v783_v43, 0.0  ;;  %2140 = vmatprep.subr.bf16.mxu0 %v3200_v36  ;;  %3005 = vmatprep.subr.bf16.mxu1 %v3959_v37 }
 0x1ed   :  { %v922_v59 = vmax.f32 %v785_v47, 0.0  ;;  %v3214_v47 = vld [vmem:[%s5259_s5 + $0x208] ss:$28 sps:$4 sm:$0xff]  }
 0x1ee   :  { %v3986_v60 = vpack.c.bf16 %v921_v54, %v919_v53  ;;  %v3219_v54 = vld [vmem:[%s5259_s5 + $0x244] ss:$28 sps:$4 sm:$0xff]  }
 0x1ef   :  { %v3988_v61 = vpack.c.bf16 %v922_v59, %v920_v58  ;;  %v788_v62 = vpop.f32.mrb[16].mxu1  ;;  %2141 = vmatpush1.bf16.msra.mxu0 %v3198_v50  ;;  %3013 = vmatpush3.bf16.msra.mxu1 %v3975_v51 }
 0x1f0   :  { %v789_v3 = vadd.f32 %v788_v62, %v3835_v45  ;;  %v790_v5 = vpop.f32.mrb[17].mxu1  ;;  %2142 = vmatprep.subr.bf16.mxu0 %v3203_v55  ;;  %3006 = vmatprep.subr.bf16.mxu1 %v3984_v57 }
 0x1f1   :  { %v791_v10 = vadd.f32 %v790_v5, %v3838_v31  ;;  %v792_v12 = vpop.f32.mrb[18].mxu1  ;;  %1806 = vmatprep.mubr.bf16.mxu0 %v3988_v61  ;;  %1999 = vmatprep.mubr.bf16.mxu1 %v3988_v61 }
 0x1f2   :  { %v793_v13 = vadd.f32 %v792_v12, %v3835_v45  ;;  %v794_v14 = vpop.f32.mrb[19].mxu1  ;;  %1807 = vmatmul.mubr.bf16.gmra.mrb[76].mxu0 %v3986_v60  ;;  %2000 = vmatmul.mubr.bf16.gmra.mrb[76].mxu1 %v3986_v60  ;;  %v923_v19 = vmax.f32 %v789_v3, 0.0  ;;  %v3217_v3 = vld [vmem:[%s5259_s5 + $0x240] ss:$28 sps:$4 sm:$0xff]  }
 0x1f3   :  { %v795_v16 = vadd.f32 %v794_v14, %v3838_v31  ;;  %2143 = vmatpush1.bf16.msra.mxu0 %v3201_v0  ;;  %3014 = vmatpush3.bf16.msra.mxu1 %v3997_v2  ;;  %v924_v23 = vmax.f32 %v791_v10, 0.0  ;;  %v3224_v10 = vld [vmem:[%s5259_s5 + $0x27c] ss:$28 sps:$4 sm:$0xff]  }
 0x1f4   :  { %v925_v20 = vmax.f32 %v793_v13, 0.0  ;;  %2144 = vmatprep.subr.bf16.mxu0 %v3208_v6  ;;  %3007 = vmatprep.subr.bf16.mxu1 %v4007_v9 }
 0x1f5   :  { %v926_v24 = vmax.f32 %v795_v16, 0.0 }
 0x1f6   :  { %v4029_v25 = vpack.c.bf16 %v925_v20, %v923_v19  ;;  %v3222_v19 = vld [vmem:[%s5259_s5 + $0x278] ss:$28 sps:$4 sm:$0xff]  }
 0x1f7   :  { %v4031_v27 = vpack.c.bf16 %v926_v24, %v924_v23  ;;  %v798_v28 = vpop.f32.mrb[20].mxu1  ;;  %2145 = vmatpush1.bf16.msra.mxu0 %v3206_v17  ;;  %3015 = vmatpush3.bf16.msra.mxu1 %v4023_v18  ;;  %v3227_v23 = vld [vmem:[%s5259_s5 + $0x2b4] ss:$28 sps:$4 sm:$0xff]  }
 0x1f8   :  { %v799_v33 = vadd.f32 %v798_v28, %v3835_v45  ;;  %v800_v35 = vpop.f32.mrb[21].mxu1  ;;  %2146 = vmatprep.subr.bf16.mxu0 %v3211_v21 }
 0x1f9   :  { %v801_v36 = vadd.f32 %v800_v35, %v3838_v31  ;;  %v802_v39 = vpop.f32.mrb[22].mxu1  ;;  %1816 = vmatprep.mubr.bf16.mxu0 %v4031_v27  ;;  %2009 = vmatprep.mubr.bf16.mxu1 %v4031_v27 }
 0x1fa   :  { %v803_v42 = vadd.f32 %v802_v39, %v3835_v45  ;;  %v804_v43 = vpop.f32.mrb[23].mxu1  ;;  %1817 = vmatmul.mubr.bf16.gmra.mrb[80].mxu0 %v4029_v25  ;;  %2010 = vmatmul.mubr.bf16.gmra.mrb[80].mxu1 %v4029_v25  ;;  %v927_v50 = vmax.f32 %v799_v33, 0.0 }
 0x1fb   :  { %v805_v46 = vadd.f32 %v804_v43, %v3838_v31  ;;  %2147 = vmatpush1.bf16.msra.mxu0 %v3209_v32  ;;  %v928_v55 = vmax.f32 %v801_v36, 0.0 }
 0x1fc   :  { %v929_v53 = vmax.f32 %v803_v42, 0.0  ;;  %2148 = vmatprep.subr.bf16.mxu0 %v3216_v1  ;;  %v3225_v1 = vld [vmem:[%s5259_s5 + $0x2b0] ss:$28 sps:$4 sm:$0xff]  }
 0x1fd   :  { %v930_v58 = vmax.f32 %v805_v46, 0.0  ;;  %v3232_v42 = vld [vmem:[%s5259_s5 + $0x2ec] ss:$28 sps:$4 sm:$0xff]  }
 0x1fe   :  { %v4054_v59 = vpack.c.bf16 %v929_v53, %v927_v50 }
 0x1ff   :  { %v4056_v62 = vpack.c.bf16 %v930_v58, %v928_v55  ;;  %v808_v0 = vpop.f32.mrb[24].mxu1  ;;  %2149 = vmatpush1.bf16.msra.mxu0 %v3214_v47 }
 0x200   :  { %v809_v5 = vadd.f32 %v808_v0, %v3835_v45  ;;  %v810_v6 = vpop.f32.mrb[25].mxu1  ;;  %2150 = vmatprep.subr.bf16.mxu0 %v3219_v54  ;;  %v3230_v54 = vld [vmem:[%s5259_s5 + $0x2e8] ss:$28 sps:$4 sm:$0xff]  }
 0x201   :  { %v811_v12 = vadd.f32 %v810_v6, %v3838_v31  ;;  %v812_v13 = vpop.f32.mrb[26].mxu1  ;;  %1826 = vmatprep.mubr.bf16.mxu0 %v4056_v62  ;;  %2019 = vmatprep.mubr.bf16.mxu1 %v4056_v62  ;;  %v3235_v0 = vld [vmem:[%s5259_s5 + $0x324] ss:$28 sps:$4 sm:$0xff]  }
 0x202   :  { %v813_v14 = vadd.f32 %v812_v13, %v3835_v45  ;;  %v814_v16 = vpop.f32.mrb[27].mxu1  ;;  %1827 = vmatmul.mubr.bf16.gmra.mrb[84].mxu0 %v4054_v59  ;;  %2020 = vmatmul.mubr.bf16.gmra.mrb[84].mxu1 %v4054_v59  ;;  %v931_v20 = vmax.f32 %v809_v5, 0.0  ;;  %v3233_v13 = vld [vmem:[%s5259_s5 + $0x320] ss:$28 sps:$4 sm:$0xff]  }
 0x203   :  { %v815_v17 = vadd.f32 %v814_v16, %v3838_v31  ;;  %2151 = vmatpush1.bf16.msra.mxu0 %v3217_v3  ;;  %v932_v24 = vmax.f32 %v811_v12, 0.0 }
 0x204   :  { %v933_v21 = vmax.f32 %v813_v14, 0.0  ;;  %2152 = vmatprep.subr.bf16.mxu0 %v3224_v10 }
 0x205   :  { %v934_v28 = vmax.f32 %v815_v17, 0.0  ;;  %v3240_v17 = vld [vmem:[%s5259_s5 + $0x35c] ss:$28 sps:$4 sm:$0xff]  }
 0x206   :  { %v4078_v32 = vpack.c.bf16 %v933_v21, %v931_v20 }
 0x207   :  { %v4080_v33 = vpack.c.bf16 %v934_v28, %v932_v24  ;;  %v818_v35 = vpop.f32.mrb[28].mxu1  ;;  %2153 = vmatpush1.bf16.msra.mxu0 %v3222_v19  ;;  %v3238_v28 = vld [vmem:[%s5259_s5 + $0x358] ss:$28 sps:$4 sm:$0xff]  }
 0x208   :  { %v819_v36 = vadd.f32 %v818_v35, %v3835_v45  ;;  %v820_v39 = vpop.f32.mrb[29].mxu1  ;;  %2154 = vmatprep.subr.bf16.mxu0 %v3227_v23 }
 0x209   :  { %v821_v43 = vadd.f32 %v820_v39, %v3838_v31  ;;  %v822_v46 = vpop.f32.mrb[30].mxu1  ;;  %1836 = vmatprep.mubr.bf16.mxu0 %v4080_v33  ;;  %2029 = vmatprep.mubr.bf16.mxu1 %v4080_v33 }
 0x20a   :  { %v823_v47 = vadd.f32 %v822_v46, %v3835_v45  ;;  %v824_v50 = vpop.f32.mrb[31].mxu1  ;;  %1837 = vmatmul.mubr.bf16.gmra.mrb[88].mxu0 %v4078_v32  ;;  %2030 = vmatmul.mubr.bf16.gmra.mrb[88].mxu1 %v4078_v32  ;;  %v935_v55 = vmax.f32 %v819_v36, 0.0 }
 0x20b   :  { %v825_v53 = vadd.f32 %v824_v50, %v3838_v31  ;;  %2155 = vmatpush1.bf16.msra.mxu0 %v3225_v1  ;;  %v936_v3 = vmax.f32 %v821_v43, 0.0 }
 0x20c   :  { %v937_v58 = vmax.f32 %v823_v47, 0.0  ;;  %2156 = vmatprep.subr.bf16.mxu0 %v3232_v42 }
 0x20d   :  { %v938_v5 = vmax.f32 %v825_v53, 0.0 }
 0x20e   :  { %v4102_v6 = vpack.c.bf16 %v937_v58, %v935_v55 }
 0x20f   :  { %v4104_v10 = vpack.c.bf16 %v938_v5, %v936_v3  ;;  %v828_v12 = vpop.f32.mrb[32].mxu1  ;;  %2157 = vmatpush1.bf16.msra.mxu0 %v3230_v54 }
 0x210   :  { %v829_v14 = vadd.f32 %v828_v12, %v3835_v45  ;;  %v830_v16 = vpop.f32.mrb[33].mxu1  ;;  %2158 = vmatprep.subr.bf16.mxu0 %v3235_v0 }
 0x211   :  { %v831_v19 = vadd.f32 %v830_v16, %v3838_v31  ;;  %v832_v20 = vpop.f32.mrb[34].mxu1  ;;  %1846 = vmatprep.mubr.bf16.mxu0 %v4104_v10  ;;  %2039 = vmatprep.mubr.bf16.mxu1 %v4104_v10 }
 0x212   :  { %v833_v21 = vadd.f32 %v832_v20, %v3835_v45  ;;  %v834_v23 = vpop.f32.mrb[35].mxu1  ;;  %1847 = vmatmul.mubr.bf16.gmra.mrb[92].mxu0 %v4102_v6  ;;  %2040 = vmatmul.mubr.bf16.gmra.mrb[92].mxu1 %v4102_v6  ;;  %v939_v35 = vmax.f32 %v829_v14, 0.0 }
 0x213   :  { %v835_v24 = vadd.f32 %v834_v23, %v3838_v31  ;;  %2159 = vmatpush1.bf16.msra.mxu0 %v3233_v13  ;;  %v940_v36 = vmax.f32 %v831_v19, 0.0 }
 0x214   :  { %v941_v1 = vmax.f32 %v833_v21, 0.0  ;;  %2160 = vmatprep.subr.bf16.mxu0 %v3240_v17 }
 0x215   :  { %v942_v39 = vmax.f32 %v835_v24, 0.0 }
 0x216   :  { %v4123_v42 = vpack.c.bf16 %v941_v1, %v939_v35 }
 0x217   :  { %v4125_v43 = vpack.c.bf16 %v942_v39, %v940_v36  ;;  %v838_v46 = vpop.f32.mrb[36].mxu1  ;;  %2161 = vmatpush1.bf16.msra.mxu0 %v3238_v28 }
 0x218   :  { %v839_v47 = vadd.f32 %v838_v46, %v3835_v45  ;;  %v840_v50 = vpop.f32.mrb[37].mxu1  ;;  %2888 = vmatprep.subr.bf16.mxu0 %v3828_v30 }
 0x219   :  { %v841_v53 = vadd.f32 %v840_v50, %v3838_v31  ;;  %v842_v54 = vpop.f32.mrb[38].mxu1  ;;  %1856 = vmatprep.mubr.bf16.mxu0 %v4125_v43  ;;  %2049 = vmatprep.mubr.bf16.mxu1 %v4125_v43 }
 0x21a   :  { %v843_v55 = vadd.f32 %v842_v54, %v3835_v45  ;;  %v844_v58 = vpop.f32.mrb[39].mxu1  ;;  %1857 = vmatmul.mubr.bf16.gmra.mrb[96].mxu0 %v4123_v42  ;;  %2050 = vmatmul.mubr.bf16.gmra.mrb[96].mxu1 %v4123_v42  ;;  %v943_v3 = vmax.f32 %v839_v47, 0.0 }
 0x21b   :  { %v845_v0 = vadd.f32 %v844_v58, %v3838_v31  ;;  %v944_v12 = vmax.f32 %v841_v53, 0.0 }
 0x21c   :  { %v945_v5 = vmax.f32 %v843_v55, 0.0 }
 0x21d   :  { %v946_v30 = vmax.f32 %v845_v0, 0.0 }
 0x21e   :  { %v4136_v13 = vpack.c.bf16 %v945_v5, %v943_v3 }
 0x21f   :  { %v4138_v14 = vpack.c.bf16 %v946_v30, %v944_v12  ;;  %v848_v16 = vpop.f32.mrb[40].mxu1 }
 0x220   :  { %v849_v17 = vadd.f32 %v848_v16, %v3835_v45  ;;  %v850_v19 = vpop.f32.mrb[41].mxu1 }
 0x221   :  { %v851_v20 = vadd.f32 %v850_v19, %v3838_v31  ;;  %v852_v21 = vpop.f32.mrb[42].mxu1  ;;  %1866 = vmatprep.mubr.bf16.mxu0 %v4138_v14  ;;  %2059 = vmatprep.mubr.bf16.mxu1 %v4138_v14 }
 0x222   :  { %v853_v23 = vadd.f32 %v852_v21, %v3835_v45  ;;  %v854_v24 = vpop.f32.mrb[43].mxu1  ;;  %1867 = vmatmul.mubr.bf16.gmra.mrb[100].mxu0 %v4136_v13  ;;  %2060 = vmatmul.mubr.bf16.gmra.mrb[100].mxu1 %v4136_v13  ;;  %v947_v35 = vmax.f32 %v849_v17, 0.0 }
 0x223   :  { %v855_v28 = vadd.f32 %v854_v24, %v3838_v31  ;;  %v948_v36 = vmax.f32 %v851_v20, 0.0 }
 0x224   :  { %v949_v1 = vmax.f32 %v853_v23, 0.0 }
 0x225   :  { %v950_v39 = vmax.f32 %v855_v28, 0.0 }
 0x226   :  { %v4148_v46 = vpack.c.bf16 %v949_v1, %v947_v35 }
 0x227   :  { %v4150_v47 = vpack.c.bf16 %v950_v39, %v948_v36  ;;  %v858_v50 = vpop.f32.mrb[44].mxu1 }
 0x228   :  { %v859_v53 = vadd.f32 %v858_v50, %v3835_v45  ;;  %v860_v54 = vpop.f32.mrb[45].mxu1 }
 0x229   :  { %v861_v55 = vadd.f32 %v860_v54, %v3838_v31  ;;  %v862_v58 = vpop.f32.mrb[46].mxu1  ;;  %1876 = vmatprep.mubr.bf16.mxu0 %v4150_v47  ;;  %2069 = vmatprep.mubr.bf16.mxu1 %v4150_v47 }
 0x22a   :  { %v863_v0 = vadd.f32 %v862_v58, %v3835_v45  ;;  %v864_v3 = vpop.f32.mrb[47].mxu1  ;;  %1877 = vmatmul.mubr.bf16.gmra.mrb[104].mxu0 %v4148_v46  ;;  %2070 = vmatmul.mubr.bf16.gmra.mrb[104].mxu1 %v4148_v46  ;;  %v951_v12 = vmax.f32 %v859_v53, 0.0 }
 0x22b   :  { %v865_v5 = vadd.f32 %v864_v3, %v3838_v31  ;;  %v952_v16 = vmax.f32 %v861_v55, 0.0 }
 0x22c   :  { %v953_v30 = vmax.f32 %v863_v0, 0.0 }
 0x22d   :  { %v954_v17 = vmax.f32 %v865_v5, 0.0 }
 0x22e   :  { %v4160_v19 = vpack.c.bf16 %v953_v30, %v951_v12 }
 0x22f   :  { %v4162_v20 = vpack.c.bf16 %v954_v17, %v952_v16  ;;  %v868_v21 = vpop.f32.mrb[48].mxu1 }
 0x230   :  { %v869_v23 = vadd.f32 %v868_v21, %v3835_v45  ;;  %v870_v24 = vpop.f32.mrb[49].mxu1 }
 0x231   :  { %v871_v28 = vadd.f32 %v870_v24, %v3838_v31  ;;  %v872_v35 = vpop.f32.mrb[50].mxu1  ;;  %1886 = vmatprep.mubr.bf16.mxu0 %v4162_v20  ;;  %2079 = vmatprep.mubr.bf16.mxu1 %v4162_v20 }
 0x232   :  { %v873_v1 = vadd.f32 %v872_v35, %v3835_v45  ;;  %v874_v36 = vpop.f32.mrb[51].mxu1  ;;  %1887 = vmatmul.mubr.bf16.gmra.mrb[108].mxu0 %v4160_v19  ;;  %2080 = vmatmul.mubr.bf16.gmra.mrb[108].mxu1 %v4160_v19  ;;  %v955_v50 = vmax.f32 %v869_v23, 0.0 }
 0x233   :  { %v875_v39 = vadd.f32 %v874_v36, %v3838_v31  ;;  %v956_v54 = vmax.f32 %v871_v28, 0.0 }
 0x234   :  { %v957_v53 = vmax.f32 %v873_v1, 0.0 }
 0x235   :  { %v958_v55 = vmax.f32 %v875_v39, 0.0 }
 0x236   :  { %v4172_v58 = vpack.c.bf16 %v957_v53, %v955_v50 }
 0x237   :  { %v4174_v0 = vpack.c.bf16 %v958_v55, %v956_v54  ;;  %v878_v3 = vpop.f32.mrb[52].mxu1 }
 0x238   :  { %v879_v5 = vadd.f32 %v878_v3, %v3835_v45  ;;  %v880_v12 = vpop.f32.mrb[53].mxu1 }
 0x239   :  { %v881_v30 = vadd.f32 %v880_v12, %v3838_v31  ;;  %v882_v16 = vpop.f32.mrb[54].mxu1  ;;  %1896 = vmatprep.mubr.bf16.mxu0 %v4174_v0  ;;  %2089 = vmatprep.mubr.bf16.mxu1 %v4174_v0 }
 0x23a   :  { %v883_v17 = vadd.f32 %v882_v16, %v3835_v45  ;;  %v884_v21 = vpop.f32.mrb[55].mxu1  ;;  %1897 = vmatmul.mubr.bf16.gmra.mrb[112].mxu0 %v4172_v58  ;;  %2090 = vmatmul.mubr.bf16.gmra.mrb[112].mxu1 %v4172_v58  ;;  %v959_v24 = vmax.f32 %v879_v5, 0.0 }
 0x23b   :  { %v885_v23 = vadd.f32 %v884_v21, %v3838_v31  ;;  %v960_v35 = vmax.f32 %v881_v30, 0.0 }
 0x23c   :  { %v961_v28 = vmax.f32 %v883_v17, 0.0 }
 0x23d   :  { %v962_v1 = vmax.f32 %v885_v23, 0.0 }
 0x23e   :  { %v4184_v36 = vpack.c.bf16 %v961_v28, %v959_v24 }
 0x23f   :  { %v4186_v39 = vpack.c.bf16 %v962_v1, %v960_v35  ;;  %v888_v50 = vpop.f32.mrb[56].mxu1 }
 0x240   :  { %v889_v53 = vadd.f32 %v888_v50, %v3835_v45  ;;  %v890_v54 = vpop.f32.mrb[57].mxu1 }
 0x241   :  { %v891_v55 = vadd.f32 %v890_v54, %v3838_v31  ;;  %v892_v3 = vpop.f32.mrb[58].mxu1  ;;  %1906 = vmatprep.mubr.bf16.mxu0 %v4186_v39  ;;  %2099 = vmatprep.mubr.bf16.mxu1 %v4186_v39 }
 0x242   :  { %v893_v5 = vadd.f32 %v892_v3, %v3835_v45  ;;  %v894_v12 = vpop.f32.mrb[59].mxu1  ;;  %1907 = vmatmul.mubr.bf16.gmra.mrb[116].mxu0 %v4184_v36  ;;  %2100 = vmatmul.mubr.bf16.gmra.mrb[116].mxu1 %v4184_v36  ;;  %v963_v16 = vmax.f32 %v889_v53, 0.0 }
 0x243   :  { %v895_v30 = vadd.f32 %v894_v12, %v3838_v31  ;;  %v964_v21 = vmax.f32 %v891_v55, 0.0 }
 0x244   :  { %v965_v17 = vmax.f32 %v893_v5, 0.0 }
 0x245   :  { %v966_v23 = vmax.f32 %v895_v30, 0.0 }
 0x246   :  { %v4196_v24 = vpack.c.bf16 %v965_v17, %v963_v16 }
 0x247   :  { %v4198_v28 = vpack.c.bf16 %v966_v23, %v964_v21  ;;  %v898_v35 = vpop.f32.mrb[60].mxu1 }
 0x248   :  { %v899_v1 = vadd.f32 %v898_v35, %v3835_v45  ;;  %v900_v50 = vpop.f32.mrb[61].mxu1 }
 0x249   :  { %v901_v54 = vadd.f32 %v900_v50, %v3838_v31  ;;  %v902_v3 = vpop.f32.mrb[62].mxu1  ;;  %1916 = vmatprep.mubr.bf16.mxu0 %v4198_v28  ;;  %2109 = vmatprep.mubr.bf16.mxu1 %v4198_v28 }
 0x24a   :  { %v903_v53 = vadd.f32 %v902_v3, %v3835_v45  ;;  %v904_v5 = vpop.f32.mrb[63].mxu1  ;;  %1917 = vmatmul.mubr.bf16.gmra.mrb[120].mxu0 %v4196_v24  ;;  %2110 = vmatmul.mubr.bf16.gmra.mrb[120].mxu1 %v4196_v24  ;;  %v967_v12 = vmax.f32 %v899_v1, 0.0  ;;  %v1143_v45 = vsub.s32 2, %v3561_v38 }
 0x24b   :  { %v905_v55 = vadd.f32 %v904_v5, %v3838_v31  ;;  %v968_v16 = vmax.f32 %v901_v54, 0.0  ;;  %v4277_v31 = vld [vmem:[%s5262_s6] sm:$0x7f] }
 0x24c   :  { %v969_v30 = vmax.f32 %v903_v53, 0.0 }
 0x24d   :  { %v970_v17 = vmax.f32 %v905_v55, 0.0 }
 0x24e   :  { %v4208_v21 = vpack.c.bf16 %v969_v30, %v967_v12 }
 0x24f   :  { %v4210_v23 = vpack.c.bf16 %v970_v17, %v968_v16 }
 0x251   :  { %1926 = vmatprep.mubr.bf16.mxu0 %v4210_v23  ;;  %2119 = vmatprep.mubr.bf16.mxu1 %v4210_v23 }
 0x252   :  { %1927 = vmatmul.mubr.bf16.gmra.mrb[124].mxu0 %v4208_v21  ;;  %2120 = vmatmul.mubr.bf16.gmra.mrb[124].mxu1 %v4208_v21 }
 0x253   :  { %2162 = vmatprep.mubr.bf16.mxu0 %v3846_v49  ;;  %2371 = vmatprep.mubr.bf16.mxu1 %v3940_v44 }
 0x25a   :  { %2163 = vmatmul.mubr.bf16.vlgmr.msra.gmra.mrb[128].mxu0 %v3844_v48  ;;  %2372 = vmatmul.mubr.bf16.vlgmr.msra.gmra.mrb[128].mxu1 %v3938_v29 }
 0x25b   :  { %2889 = vmatpush3.bf16.msra.mxu0 %v3854_v52  ;;  %2172 = vmatprep.mubr.bf16.mxu0 %v3892_v8  ;;  %v1147_v52 = vsub.s32 3, %v3561_v38 }
 0x25c   :  { %2379 = vmatprep.mubr.bf16.mxu1 %v3988_v61  ;;  %2890 = vmatprep.subr.bf16.mxu0 %v3863_v56  ;;  %v4284_v56 = vrot.slane %v4277_v31, %v3567_v40 }
 0x25f   :  { %2891 = vmatpush3.bf16.msra.mxu0 %v3879_v63  ;;  %v4287_v63 = vrot.slane %v4277_v31, %v1143_v45 }
 0x260   :  { %2892 = vmatprep.subr.bf16.mxu0 %v3888_v4  ;;  %v4293_v4 = vrot.slane %v4277_v31, %v3570_v41 }
 0x262   :  { %2173 = vmatmul.mubr.bf16.gmra.mrb[132].mxu0 %v3890_v7  ;;  %2380 = vmatmul.mubr.bf16.gmra.mrb[132].mxu1 %v3986_v60 }
 0x263   :  { %2182 = vmatprep.mubr.bf16.mxu0 %v3940_v44  ;;  %2387 = vmatprep.mubr.bf16.mxu1 %v4031_v27 }
 0x264   :  { %2893 = vmatpush3.bf16.msra.mxu0 %v3901_v11  ;;  %v4296_v11 = vrot.slane %v4277_v31, %v1147_v52 }
 0x265   :  { %2894 = vmatprep.subr.bf16.mxu0 %v3911_v15 }
 0x268   :  { %2895 = vmatpush3.bf16.msra.mxu0 %v3927_v22 }
 0x269   :  { %2896 = vmatprep.subr.bf16.mxu0 %v3936_v26 }
 0x26a   :  { %2183 = vmatmul.mubr.bf16.gmra.mrb[136].mxu0 %v3938_v29  ;;  %2388 = vmatmul.mubr.bf16.gmra.mrb[136].mxu1 %v4029_v25 }
 0x26b   :  { %2192 = vmatprep.mubr.bf16.mxu0 %v3988_v61  ;;  %2395 = vmatprep.mubr.bf16.mxu1 %v4056_v62 }
 0x26c   :  { %2897 = vmatpush3.bf16.msra.mxu0 %v3949_v34 }
 0x26d   :  { %2898 = vmatprep.subr.bf16.mxu0 %v3959_v37 }
 0x270   :  { %2899 = vmatpush3.bf16.msra.mxu0 %v3975_v51 }
 0x271   :  { %2900 = vmatprep.subr.bf16.mxu0 %v3984_v57 }
 0x272   :  { %2193 = vmatmul.mubr.bf16.gmra.mrb[140].mxu0 %v3986_v60  ;;  %2396 = vmatmul.mubr.bf16.gmra.mrb[140].mxu1 %v4054_v59 }
 0x273   :  { %2202 = vmatprep.mubr.bf16.mxu0 %v4031_v27  ;;  %2403 = vmatprep.mubr.bf16.mxu1 %v4080_v33 }
 0x274   :  { %2901 = vmatpush3.bf16.msra.mxu0 %v3997_v2 }
 0x275   :  { %2902 = vmatprep.subr.bf16.mxu0 %v4007_v9 }
 0x278   :  { %2903 = vmatpush3.bf16.msra.mxu0 %v4023_v18 }
 0x27a   :  { %2203 = vmatmul.mubr.bf16.gmra.mrb[144].mxu0 %v4029_v25  ;;  %2404 = vmatmul.mubr.bf16.gmra.mrb[144].mxu1 %v4078_v32 }
 0x27b   :  { %2212 = vmatprep.mubr.bf16.mxu0 %v4056_v62  ;;  %2411 = vmatprep.mubr.bf16.mxu1 %v4104_v10 }
 0x282   :  { %2213 = vmatmul.mubr.bf16.gmra.mrb[148].mxu0 %v4054_v59  ;;  %2412 = vmatmul.mubr.bf16.gmra.mrb[148].mxu1 %v4102_v6 }
 0x283   :  { %2222 = vmatprep.mubr.bf16.mxu0 %v4080_v33  ;;  %2419 = vmatprep.mubr.bf16.mxu1 %v4125_v43 }
 0x28a   :  { %2223 = vmatmul.mubr.bf16.gmra.mrb[152].mxu0 %v4078_v32  ;;  %2420 = vmatmul.mubr.bf16.gmra.mrb[152].mxu1 %v4123_v42 }
 0x28b   :  { %2232 = vmatprep.mubr.bf16.mxu0 %v4104_v10  ;;  %2427 = vmatprep.mubr.bf16.mxu1 %v4138_v14 }
 0x292   :  { %2233 = vmatmul.mubr.bf16.gmra.mrb[156].mxu0 %v4102_v6  ;;  %2428 = vmatmul.mubr.bf16.gmra.mrb[156].mxu1 %v4136_v13 }
 0x293   :  { %2242 = vmatprep.mubr.bf16.mxu0 %v4125_v43  ;;  %2435 = vmatprep.mubr.bf16.mxu1 %v4150_v47 }
 0x29a   :  { %2243 = vmatmul.mubr.bf16.gmra.mrb[160].mxu0 %v4123_v42  ;;  %2436 = vmatmul.mubr.bf16.gmra.mrb[160].mxu1 %v4148_v46 }
 0x29b   :  { %2252 = vmatprep.mubr.bf16.mxu0 %v4138_v14  ;;  %2443 = vmatprep.mubr.bf16.mxu1 %v4162_v20 }
 0x2a2   :  { %2253 = vmatmul.mubr.bf16.gmra.mrb[164].mxu0 %v4136_v13  ;;  %2444 = vmatmul.mubr.bf16.gmra.mrb[164].mxu1 %v4160_v19 }
 0x2a3   :  { %2262 = vmatprep.mubr.bf16.mxu0 %v4150_v47  ;;  %2451 = vmatprep.mubr.bf16.mxu1 %v4174_v0 }
 0x2aa   :  { %2263 = vmatmul.mubr.bf16.gmra.mrb[168].mxu0 %v4148_v46  ;;  %2452 = vmatmul.mubr.bf16.gmra.mrb[168].mxu1 %v4172_v58 }
 0x2ab   :  { %2272 = vmatprep.mubr.bf16.mxu0 %v4162_v20  ;;  %2459 = vmatprep.mubr.bf16.mxu1 %v4186_v39 }
 0x2ad   :  { %v1778_v15 = vpop.f32.mrb[64].mxu0  ;;  %v1971_v22 = vpop.f32.mrb[64].mxu1 }
 0x2ae   :  { %v1779_v26 = vadd.f32 %v1778_v15, %v4284_v56  ;;  %v1972_v40 = vadd.f32 %v1971_v22, %v4287_v63  ;;  %v1780_v29 = vpop.f32.mrb[65].mxu0  ;;  %v1973_v44 = vpop.f32.mrb[65].mxu1 }
 0x2af   :  { %v1781_v34 = vadd.f32 %v1780_v29, %v4293_v4  ;;  %v1974_v37 = vadd.f32 %v1973_v44, %v4296_v11  ;;  %v1782_v51 = vpop.f32.mrb[66].mxu0  ;;  %v1975_v57 = vpop.f32.mrb[66].mxu1 }
 0x2b0   :  { %2484 = vst [vmem:[%s5263_s7] sm:$0xff] %v1779_v26  ;;  %2486 = vst [vmem:[%s5263_s7 + $0x10] sm:$0xff] %v1972_v40  ;;  %v1783_v41 = vadd.f32 %v1782_v51, %v4284_v56  ;;  %v1976_v60 = vadd.f32 %v1975_v57, %v4287_v63  ;;  %v1784_v61 = vpop.f32.mrb[67].mxu0  ;;  %v1977_v2 = vpop.f32.mrb[67].mxu1 }
 0x2b1   :  { %2485 = vst [vmem:[%s5263_s7 + $0x8] sm:$0xff] %v1781_v34  ;;  %2487 = vst [vmem:[%s5263_s7 + $0x18] sm:$0xff] %v1974_v37  ;;  %v1785_v9 = vadd.f32 %v1784_v61, %v4293_v4  ;;  %v1978_v18 = vadd.f32 %v1977_v2, %v4296_v11 }
 0x2b2   :  { %2492 = vst [vmem:[%s5263_s7 + $0x38] sm:$0xff] %v1783_v41  ;;  %2494 = vst [vmem:[%s5263_s7 + $0x48] sm:$0xff] %v1976_v60  ;;  %2273 = vmatmul.mubr.bf16.gmra.mrb[172].mxu0 %v4160_v19  ;;  %2460 = vmatmul.mubr.bf16.gmra.mrb[172].mxu1 %v4184_v36 }
 0x2b3   :  { %2493 = vst [vmem:[%s5263_s7 + $0x40] sm:$0xff] %v1785_v9  ;;  %2495 = vst [vmem:[%s5263_s7 + $0x50] sm:$0xff] %v1978_v18  ;;  %2282 = vmatprep.mubr.bf16.mxu0 %v4174_v0  ;;  %2467 = vmatprep.mubr.bf16.mxu1 %v4198_v28 }
 0x2b5   :  { %v1788_v25 = vpop.f32.mrb[68].mxu0  ;;  %v1981_v27 = vpop.f32.mrb[68].mxu1 }
 0x2b6   :  { %v1789_v59 = vadd.f32 %v1788_v25, %v4284_v56  ;;  %v1982_v62 = vadd.f32 %v1981_v27, %v4287_v63  ;;  %v1790_v32 = vpop.f32.mrb[69].mxu0  ;;  %v1983_v33 = vpop.f32.mrb[69].mxu1 }
 0x2b7   :  { %v1791_v6 = vadd.f32 %v1790_v32, %v4293_v4  ;;  %v1984_v10 = vadd.f32 %v1983_v33, %v4296_v11  ;;  %v1792_v42 = vpop.f32.mrb[70].mxu0  ;;  %v1985_v43 = vpop.f32.mrb[70].mxu1 }
 0x2b8   :  { %2499 = vst [vmem:[%s5263_s7 + $0x70] sm:$0xff] %v1789_v59  ;;  %2501 = vst [vmem:[%s5263_s7 + $0x80] sm:$0xff] %v1982_v62  ;;  %v1793_v13 = vadd.f32 %v1792_v42, %v4284_v56  ;;  %v1986_v14 = vadd.f32 %v1985_v43, %v4287_v63  ;;  %v1794_v46 = vpop.f32.mrb[71].mxu0  ;;  %v1987_v47 = vpop.f32.mrb[71].mxu1 }
 0x2b9   :  { %2500 = vst [vmem:[%s5263_s7 + $0x78] sm:$0xff] %v1791_v6  ;;  %2502 = vst [vmem:[%s5263_s7 + $0x88] sm:$0xff] %v1984_v10  ;;  %v1795_v19 = vadd.f32 %v1794_v46, %v4293_v4  ;;  %v1988_v20 = vadd.f32 %v1987_v47, %v4296_v11 }
 0x2ba   :  { %2506 = vst [vmem:[%s5263_s7 + $0xa8] sm:$0xff] %v1793_v13  ;;  %2508 = vst [vmem:[%s5263_s7 + $0xb8] sm:$0xff] %v1986_v14  ;;  %2283 = vmatmul.mubr.bf16.gmra.mrb[176].mxu0 %v4172_v58  ;;  %2468 = vmatmul.mubr.bf16.gmra.mrb[176].mxu1 %v4196_v24 }
 0x2bb   :  { %2507 = vst [vmem:[%s5263_s7 + $0xb0] sm:$0xff] %v1795_v19  ;;  %2509 = vst [vmem:[%s5263_s7 + $0xc0] sm:$0xff] %v1988_v20  ;;  %2292 = vmatprep.mubr.bf16.mxu0 %v4186_v39  ;;  %2475 = vmatprep.mubr.bf16.mxu1 %v4210_v23 }
 0x2bd   :  { %v1798_v0 = vpop.f32.mrb[72].mxu0  ;;  %v1991_v35 = vpop.f32.mrb[72].mxu1 }
 0x2be   :  { %v1799_v1 = vadd.f32 %v1798_v0, %v4284_v56  ;;  %v1992_v58 = vadd.f32 %v1991_v35, %v4287_v63  ;;  %v1800_v50 = vpop.f32.mrb[73].mxu0  ;;  %v1993_v54 = vpop.f32.mrb[73].mxu1 }
 0x2bf   :  { %v1801_v3 = vadd.f32 %v1800_v50, %v4293_v4  ;;  %v1994_v53 = vadd.f32 %v1993_v54, %v4296_v11  ;;  %v1802_v5 = vpop.f32.mrb[74].mxu0  ;;  %v1995_v55 = vpop.f32.mrb[74].mxu1 }
 0x2c0   :  { %2513 = vst [vmem:[%s5263_s7 + $0xe0] sm:$0xff] %v1799_v1  ;;  %2515 = vst [vmem:[%s5263_s7 + $0xf0] sm:$0xff] %v1992_v58  ;;  %v1803_v39 = vadd.f32 %v1802_v5, %v4284_v56  ;;  %v1996_v12 = vadd.f32 %v1995_v55, %v4287_v63  ;;  %v1804_v30 = vpop.f32.mrb[75].mxu0  ;;  %v1997_v16 = vpop.f32.mrb[75].mxu1 }
 0x2c1   :  { %2514 = vst [vmem:[%s5263_s7 + $0xe8] sm:$0xff] %v1801_v3  ;;  %2516 = vst [vmem:[%s5263_s7 + $0xf8] sm:$0xff] %v1994_v53  ;;  %v1805_v17 = vadd.f32 %v1804_v30, %v4293_v4  ;;  %v1998_v45 = vadd.f32 %v1997_v16, %v4296_v11 }
 0x2c2   :  { %2520 = vst [vmem:[%s5263_s7 + $0x118] sm:$0xff] %v1803_v39  ;;  %2522 = vst [vmem:[%s5263_s7 + $0x128] sm:$0xff] %v1996_v12  ;;  %2293 = vmatmul.mubr.bf16.gmra.mrb[180].mxu0 %v4184_v36  ;;  %2476 = vmatmul.mubr.bf16.gmra.mrb[180].mxu1 %v4208_v21 }
 0x2c3   :  { %2521 = vst [vmem:[%s5263_s7 + $0x120] sm:$0xff] %v1805_v17  ;;  %2523 = vst [vmem:[%s5263_s7 + $0x130] sm:$0xff] %v1998_v45  ;;  %2302 = vmatprep.mubr.bf16.mxu0 %v4198_v28 }
 0x2c5   :  { %v1808_v52 = vpop.f32.mrb[76].mxu0  ;;  %v2001_v15 = vpop.f32.mrb[76].mxu1 }
 0x2c6   :  { %v1809_v22 = vadd.f32 %v1808_v52, %v4284_v56  ;;  %v2002_v26 = vadd.f32 %v2001_v15, %v4287_v63  ;;  %v1810_v40 = vpop.f32.mrb[77].mxu0  ;;  %v2003_v36 = vpop.f32.mrb[77].mxu1 }
 0x2c7   :  { %v1811_v29 = vadd.f32 %v1810_v40, %v4293_v4  ;;  %v2004_v44 = vadd.f32 %v2003_v36, %v4296_v11  ;;  %v1812_v34 = vpop.f32.mrb[78].mxu0  ;;  %v2005_v37 = vpop.f32.mrb[78].mxu1 }
 0x2c8   :  { %2527 = vst [vmem:[%s5263_s7 + $0x150] sm:$0xff] %v1809_v22  ;;  %2529 = vst [vmem:[%s5263_s7 + $0x160] sm:$0xff] %v2002_v26  ;;  %v1813_v28 = vadd.f32 %v1812_v34, %v4284_v56  ;;  %v2006_v51 = vadd.f32 %v2005_v37, %v4287_v63  ;;  %v1814_v57 = vpop.f32.mrb[79].mxu0  ;;  %v2007_v41 = vpop.f32.mrb[79].mxu1 }
 0x2c9   :  { %2528 = vst [vmem:[%s5263_s7 + $0x158] sm:$0xff] %v1811_v29  ;;  %2530 = vst [vmem:[%s5263_s7 + $0x168] sm:$0xff] %v2004_v44  ;;  %v1815_v60 = vadd.f32 %v1814_v57, %v4293_v4  ;;  %v2008_v61 = vadd.f32 %v2007_v41, %v4296_v11 }
 0x2ca   :  { %2534 = vst [vmem:[%s5263_s7 + $0x188] sm:$0xff] %v1813_v28  ;;  %2536 = vst [vmem:[%s5263_s7 + $0x198] sm:$0xff] %v2006_v51  ;;  %2303 = vmatmul.mubr.bf16.gmra.mrb[184].mxu0 %v4196_v24 }
 0x2cb   :  { %2535 = vst [vmem:[%s5263_s7 + $0x190] sm:$0xff] %v1815_v60  ;;  %2537 = vst [vmem:[%s5263_s7 + $0x1a0] sm:$0xff] %v2008_v61  ;;  %2312 = vmatprep.mubr.bf16.mxu0 %v4210_v23 }
 0x2cd   :  { %v1818_v2 = vpop.f32.mrb[80].mxu0  ;;  %v2011_v9 = vpop.f32.mrb[80].mxu1 }
 0x2ce   :  { %v1819_v18 = vadd.f32 %v1818_v2, %v4284_v56  ;;  %v2012_v25 = vadd.f32 %v2011_v9, %v4287_v63  ;;  %v1820_v27 = vpop.f32.mrb[81].mxu0  ;;  %v2013_v59 = vpop.f32.mrb[81].mxu1 }
 0x2cf   :  { %v1821_v24 = vadd.f32 %v1820_v27, %v4293_v4  ;;  %v2014_v62 = vadd.f32 %v2013_v59, %v4296_v11  ;;  %v1822_v32 = vpop.f32.mrb[82].mxu0  ;;  %v2015_v33 = vpop.f32.mrb[82].mxu1 }
 0x2d0   :  { %2541 = vst [vmem:[%s5263_s7 + $0x1c0] sm:$0xff] %v1819_v18  ;;  %2543 = vst [vmem:[%s5263_s7 + $0x1d0] sm:$0xff] %v2012_v25  ;;  %v1823_v23 = vadd.f32 %v1822_v32, %v4284_v56  ;;  %v2016_v6 = vadd.f32 %v2015_v33, %v4287_v63  ;;  %v1824_v10 = vpop.f32.mrb[83].mxu0  ;;  %v2017_v42 = vpop.f32.mrb[83].mxu1 }
 0x2d1   :  { %2542 = vst [vmem:[%s5263_s7 + $0x1c8] sm:$0xff] %v1821_v24  ;;  %2544 = vst [vmem:[%s5263_s7 + $0x1d8] sm:$0xff] %v2014_v62  ;;  %v1825_v43 = vadd.f32 %v1824_v10, %v4293_v4  ;;  %v2018_v13 = vadd.f32 %v2017_v42, %v4296_v11 }
 0x2d2   :  { %2548 = vst [vmem:[%s5263_s7 + $0x1f8] sm:$0xff] %v1823_v23  ;;  %2550 = vst [vmem:[%s5263_s7 + $0x208] sm:$0xff] %v2016_v6  ;;  %2313 = vmatmul.mubr.bf16.gmra.mrb[188].mxu0 %v4208_v21 }
 0x2d3   :  { %2549 = vst [vmem:[%s5263_s7 + $0x200] sm:$0xff] %v1825_v43  ;;  %2551 = vst [vmem:[%s5263_s7 + $0x210] sm:$0xff] %v2018_v13  ;;  %2355 = vmatprep.mubr.bf16.mxu0 %v3846_v49 }
 0x2d5   :  { %v1828_v14 = vpop.f32.mrb[84].mxu0  ;;  %v2021_v46 = vpop.f32.mrb[84].mxu1 }
 0x2d6   :  { %v1829_v47 = vadd.f32 %v1828_v14, %v4284_v56  ;;  %v2022_v19 = vadd.f32 %v2021_v46, %v4287_v63  ;;  %v1830_v20 = vpop.f32.mrb[85].mxu0  ;;  %v2023_v0 = vpop.f32.mrb[85].mxu1 }
 0x2d7   :  { %v1831_v21 = vadd.f32 %v1830_v20, %v4293_v4  ;;  %v2024_v35 = vadd.f32 %v2023_v0, %v4296_v11  ;;  %v1832_v1 = vpop.f32.mrb[86].mxu0  ;;  %v2025_v58 = vpop.f32.mrb[86].mxu1 }
 0x2d8   :  { %2555 = vst [vmem:[%s5263_s7 + $0x230] sm:$0xff] %v1829_v47  ;;  %2557 = vst [vmem:[%s5263_s7 + $0x240] sm:$0xff] %v2022_v19  ;;  %v1833_v49 = vadd.f32 %v1832_v1, %v4284_v56  ;;  %v2026_v50 = vadd.f32 %v2025_v58, %v4287_v63  ;;  %v1834_v54 = vpop.f32.mrb[87].mxu0  ;;  %v2027_v3 = vpop.f32.mrb[87].mxu1 }
 0x2d9   :  { %2556 = vst [vmem:[%s5263_s7 + $0x238] sm:$0xff] %v1831_v21  ;;  %2558 = vst [vmem:[%s5263_s7 + $0x248] sm:$0xff] %v2024_v35  ;;  %v1835_v53 = vadd.f32 %v1834_v54, %v4293_v4  ;;  %v2028_v5 = vadd.f32 %v2027_v3, %v4296_v11 }
 0x2da   :  { %2562 = vst [vmem:[%s5263_s7 + $0x268] sm:$0xff] %v1833_v49  ;;  %2564 = vst [vmem:[%s5263_s7 + $0x278] sm:$0xff] %v2026_v50  ;;  %2356 = vmatmul.mubr.bf16.vlgmr.msra.gmra.mrb[192].mxu0 %v3844_v48 }
 0x2db   :  { %2563 = vst [vmem:[%s5263_s7 + $0x270] sm:$0xff] %v1835_v53  ;;  %2565 = vst [vmem:[%s5263_s7 + $0x280] sm:$0xff] %v2028_v5  ;;  %2363 = vmatprep.mubr.bf16.mxu0 %v3892_v8 }
 0x2dd   :  { %v1838_v55 = vpop.f32.mrb[88].mxu0  ;;  %v2031_v39 = vpop.f32.mrb[88].mxu1 }
 0x2de   :  { %v1839_v12 = vadd.f32 %v1838_v55, %v4284_v56  ;;  %v2032_v30 = vadd.f32 %v2031_v39, %v4287_v63  ;;  %v1840_v16 = vpop.f32.mrb[89].mxu0  ;;  %v2033_v17 = vpop.f32.mrb[89].mxu1 }
 0x2df   :  { %v1841_v48 = vadd.f32 %v1840_v16, %v4293_v4  ;;  %v2034_v45 = vadd.f32 %v2033_v17, %v4296_v11  ;;  %v1842_v52 = vpop.f32.mrb[90].mxu0  ;;  %v2035_v15 = vpop.f32.mrb[90].mxu1 }
 0x2e0   :  { %2569 = vst [vmem:[%s5263_s7 + $0x2a0] sm:$0xff] %v1839_v12  ;;  %2571 = vst [vmem:[%s5263_s7 + $0x2b0] sm:$0xff] %v2032_v30  ;;  %v1843_v8 = vadd.f32 %v1842_v52, %v4284_v56  ;;  %v2036_v22 = vadd.f32 %v2035_v15, %v4287_v63  ;;  %v1844_v26 = vpop.f32.mrb[91].mxu0  ;;  %v2037_v40 = vpop.f32.mrb[91].mxu1 }
 0x2e1   :  { %2570 = vst [vmem:[%s5263_s7 + $0x2a8] sm:$0xff] %v1841_v48  ;;  %2572 = vst [vmem:[%s5263_s7 + $0x2b8] sm:$0xff] %v2034_v45  ;;  %v1845_v36 = vadd.f32 %v1844_v26, %v4293_v4  ;;  %v2038_v29 = vadd.f32 %v2037_v40, %v4296_v11 }
 0x2e2   :  { %2576 = vst [vmem:[%s5263_s7 + $0x2d8] sm:$0xff] %v1843_v8  ;;  %2578 = vst [vmem:[%s5263_s7 + $0x2e8] sm:$0xff] %v2036_v22  ;;  %2364 = vmatmul.mubr.bf16.gmra.mrb[196].mxu0 %v3890_v7 }
 0x2e3   :  { %2577 = vst [vmem:[%s5263_s7 + $0x2e0] sm:$0xff] %v1845_v36  ;;  %2579 = vst [vmem:[%s5263_s7 + $0x2f0] sm:$0xff] %v2038_v29 }
 0x2e5   :  { %v1848_v44 = vpop.f32.mrb[92].mxu0  ;;  %v2041_v34 = vpop.f32.mrb[92].mxu1 }
 0x2e6   :  { %v1849_v37 = vadd.f32 %v1848_v44, %v4284_v56  ;;  %v2042_v28 = vadd.f32 %v2041_v34, %v4287_v63  ;;  %v1850_v51 = vpop.f32.mrb[93].mxu0  ;;  %v2043_v57 = vpop.f32.mrb[93].mxu1 }
 0x2e7   :  { %v1851_v41 = vadd.f32 %v1850_v51, %v4293_v4  ;;  %v2044_v7 = vadd.f32 %v2043_v57, %v4296_v11  ;;  %v1852_v60 = vpop.f32.mrb[94].mxu0  ;;  %v2045_v61 = vpop.f32.mrb[94].mxu1 }
 0x2e8   :  { %2583 = vst [vmem:[%s5263_s7 + $0x310] sm:$0xff] %v1849_v37  ;;  %2585 = vst [vmem:[%s5263_s7 + $0x320] sm:$0xff] %v2042_v28  ;;  %v1853_v2 = vadd.f32 %v1852_v60, %v4284_v56  ;;  %v2046_v9 = vadd.f32 %v2045_v61, %v4287_v63  ;;  %v1854_v18 = vpop.f32.mrb[95].mxu0  ;;  %v2047_v25 = vpop.f32.mrb[95].mxu1 }
 0x2e9   :  { %2584 = vst [vmem:[%s5263_s7 + $0x318] sm:$0xff] %v1851_v41  ;;  %2586 = vst [vmem:[%s5263_s7 + $0x328] sm:$0xff] %v2044_v7  ;;  %v1855_v27 = vadd.f32 %v1854_v18, %v4293_v4  ;;  %v2048_v59 = vadd.f32 %v2047_v25, %v4296_v11 }
 0x2ea   :  { %2590 = vst [vmem:[%s5263_s7 + $0x348] sm:$0xff] %v1853_v2  ;;  %2592 = vst [vmem:[%s5263_s7 + $0x358] sm:$0xff] %v2046_v9 }
 0x2eb   :  { %2591 = vst [vmem:[%s5263_s7 + $0x350] sm:$0xff] %v1855_v27  ;;  %2593 = vst [vmem:[%s5263_s7 + $0x360] sm:$0xff] %v2048_v59 }
 0x2ed   :  { %v1858_v24 = vpop.f32.mrb[96].mxu0  ;;  %v2051_v62 = vpop.f32.mrb[96].mxu1 }
 0x2ee   :  { %v1859_v32 = vadd.f32 %v1858_v24, %v4284_v56  ;;  %v2052_v33 = vadd.f32 %v2051_v62, %v4287_v63  ;;  %v1860_v23 = vpop.f32.mrb[97].mxu0  ;;  %v2053_v6 = vpop.f32.mrb[97].mxu1 }
 0x2ef   :  { %v1861_v10 = vadd.f32 %v1860_v23, %v4293_v4  ;;  %v2054_v42 = vadd.f32 %v2053_v6, %v4296_v11  ;;  %v1862_v43 = vpop.f32.mrb[98].mxu0  ;;  %v2055_v13 = vpop.f32.mrb[98].mxu1 }
 0x2f0   :  { %2597 = vst [vmem:[%s5263_s7 + $0x380] sm:$0xff] %v1859_v32  ;;  %2599 = vst [vmem:[%s5263_s7 + $0x390] sm:$0xff] %v2052_v33  ;;  %v1863_v14 = vadd.f32 %v1862_v43, %v4284_v56  ;;  %v2056_v46 = vadd.f32 %v2055_v13, %v4287_v63  ;;  %v1864_v47 = vpop.f32.mrb[99].mxu0  ;;  %v2057_v19 = vpop.f32.mrb[99].mxu1 }
 0x2f1   :  { %2598 = vst [vmem:[%s5263_s7 + $0x388] sm:$0xff] %v1861_v10  ;;  %2600 = vst [vmem:[%s5263_s7 + $0x398] sm:$0xff] %v2054_v42  ;;  %v1865_v20 = vadd.f32 %v1864_v47, %v4293_v4  ;;  %v2058_v0 = vadd.f32 %v2057_v19, %v4296_v11 }
 0x2f2   :  { %2604 = vst [vmem:[%s5263_s7 + $0x3b8] sm:$0xff] %v1863_v14  ;;  %2606 = vst [vmem:[%s5263_s7 + $0x3c8] sm:$0xff] %v2056_v46 }
 0x2f3   :  { %2605 = vst [vmem:[%s5263_s7 + $0x3c0] sm:$0xff] %v1865_v20  ;;  %2607 = vst [vmem:[%s5263_s7 + $0x3d0] sm:$0xff] %v2058_v0 }
 0x2f5   :  { %v1868_v21 = vpop.f32.mrb[100].mxu0  ;;  %v2061_v35 = vpop.f32.mrb[100].mxu1 }
 0x2f6   :  { %v1869_v1 = vadd.f32 %v1868_v21, %v4284_v56  ;;  %v2062_v58 = vadd.f32 %v2061_v35, %v4287_v63  ;;  %v1870_v49 = vpop.f32.mrb[101].mxu0  ;;  %v2063_v50 = vpop.f32.mrb[101].mxu1 }
 0x2f7   :  { %v1871_v54 = vadd.f32 %v1870_v49, %v4293_v4  ;;  %v2064_v3 = vadd.f32 %v2063_v50, %v4296_v11  ;;  %v1872_v53 = vpop.f32.mrb[102].mxu0  ;;  %v2065_v5 = vpop.f32.mrb[102].mxu1 }
 0x2f8   :  { %2611 = vst [vmem:[%s5263_s7 + $0x3f0] sm:$0xff] %v1869_v1  ;;  %2613 = vst [vmem:[%s5263_s7 + $0x400] sm:$0xff] %v2062_v58  ;;  %v1873_v55 = vadd.f32 %v1872_v53, %v4284_v56  ;;  %v2066_v39 = vadd.f32 %v2065_v5, %v4287_v63  ;;  %v1874_v12 = vpop.f32.mrb[103].mxu0  ;;  %v2067_v30 = vpop.f32.mrb[103].mxu1 }
 0x2f9   :  { %2612 = vst [vmem:[%s5263_s7 + $0x3f8] sm:$0xff] %v1871_v54  ;;  %2614 = vst [vmem:[%s5263_s7 + $0x408] sm:$0xff] %v2064_v3  ;;  %v1875_v16 = vadd.f32 %v1874_v12, %v4293_v4  ;;  %v2068_v17 = vadd.f32 %v2067_v30, %v4296_v11 }
 0x2fa   :  { %2618 = vst [vmem:[%s5263_s7 + $0x428] sm:$0xff] %v1873_v55  ;;  %2620 = vst [vmem:[%s5263_s7 + $0x438] sm:$0xff] %v2066_v39 }
 0x2fb   :  { %2619 = vst [vmem:[%s5263_s7 + $0x430] sm:$0xff] %v1875_v16  ;;  %2621 = vst [vmem:[%s5263_s7 + $0x440] sm:$0xff] %v2068_v17 }
 0x2fd   :  { %v1878_v48 = vpop.f32.mrb[104].mxu0  ;;  %v2071_v45 = vpop.f32.mrb[104].mxu1 }
 0x2fe   :  { %v1879_v52 = vadd.f32 %v1878_v48, %v4284_v56  ;;  %v2072_v15 = vadd.f32 %v2071_v45, %v4287_v63  ;;  %v1880_v8 = vpop.f32.mrb[105].mxu0  ;;  %v2073_v22 = vpop.f32.mrb[105].mxu1 }
 0x2ff   :  { %v1881_v26 = vadd.f32 %v1880_v8, %v4293_v4  ;;  %v2074_v40 = vadd.f32 %v2073_v22, %v4296_v11  ;;  %v1882_v36 = vpop.f32.mrb[106].mxu0  ;;  %v2075_v29 = vpop.f32.mrb[106].mxu1 }
 0x300   :  { %2625 = vst [vmem:[%s5263_s7 + $0x460] sm:$0xff] %v1879_v52  ;;  %2627 = vst [vmem:[%s5263_s7 + $0x470] sm:$0xff] %v2072_v15  ;;  %v1883_v44 = vadd.f32 %v1882_v36, %v4284_v56  ;;  %v2076_v34 = vadd.f32 %v2075_v29, %v4287_v63  ;;  %v1884_v37 = vpop.f32.mrb[107].mxu0  ;;  %v2077_v28 = vpop.f32.mrb[107].mxu1 }
 0x301   :  { %2626 = vst [vmem:[%s5263_s7 + $0x468] sm:$0xff] %v1881_v26  ;;  %2628 = vst [vmem:[%s5263_s7 + $0x478] sm:$0xff] %v2074_v40  ;;  %v1885_v51 = vadd.f32 %v1884_v37, %v4293_v4  ;;  %v2078_v57 = vadd.f32 %v2077_v28, %v4296_v11 }
 0x302   :  { %2632 = vst [vmem:[%s5263_s7 + $0x498] sm:$0xff] %v1883_v44  ;;  %2634 = vst [vmem:[%s5263_s7 + $0x4a8] sm:$0xff] %v2076_v34 }
 0x303   :  { %2633 = vst [vmem:[%s5263_s7 + $0x4a0] sm:$0xff] %v1885_v51  ;;  %2635 = vst [vmem:[%s5263_s7 + $0x4b0] sm:$0xff] %v2078_v57 }
 0x305   :  { %v1888_v41 = vpop.f32.mrb[108].mxu0  ;;  %v2081_v7 = vpop.f32.mrb[108].mxu1 }
 0x306   :  { %v1889_v60 = vadd.f32 %v1888_v41, %v4284_v56  ;;  %v2082_v61 = vadd.f32 %v2081_v7, %v4287_v63  ;;  %v1890_v2 = vpop.f32.mrb[109].mxu0  ;;  %v2083_v9 = vpop.f32.mrb[109].mxu1 }
 0x307   :  { %v1891_v18 = vadd.f32 %v1890_v2, %v4293_v4  ;;  %v2084_v25 = vadd.f32 %v2083_v9, %v4296_v11  ;;  %v1892_v27 = vpop.f32.mrb[110].mxu0  ;;  %v2085_v59 = vpop.f32.mrb[110].mxu1 }
 0x308   :  { %2639 = vst [vmem:[%s5263_s7 + $0x4d0] sm:$0xff] %v1889_v60  ;;  %2641 = vst [vmem:[%s5263_s7 + $0x4e0] sm:$0xff] %v2082_v61  ;;  %v1893_v24 = vadd.f32 %v1892_v27, %v4284_v56  ;;  %v2086_v62 = vadd.f32 %v2085_v59, %v4287_v63  ;;  %v1894_v32 = vpop.f32.mrb[111].mxu0  ;;  %v2087_v33 = vpop.f32.mrb[111].mxu1 }
 0x309   :  { %2640 = vst [vmem:[%s5263_s7 + $0x4d8] sm:$0xff] %v1891_v18  ;;  %2642 = vst [vmem:[%s5263_s7 + $0x4e8] sm:$0xff] %v2084_v25  ;;  %v1895_v23 = vadd.f32 %v1894_v32, %v4293_v4  ;;  %v2088_v6 = vadd.f32 %v2087_v33, %v4296_v11  ;;  %v1151_v32 = vsub.s32 4, %v3561_v38 }
 0x30a   :  { %2646 = vst [vmem:[%s5263_s7 + $0x508] sm:$0xff] %v1893_v24  ;;  %2648 = vst [vmem:[%s5263_s7 + $0x518] sm:$0xff] %v2086_v62 }
 0x30b   :  { %2647 = vst [vmem:[%s5263_s7 + $0x510] sm:$0xff] %v1895_v23  ;;  %2649 = vst [vmem:[%s5263_s7 + $0x520] sm:$0xff] %v2088_v6 }
 0x30d   :  { %v1898_v10 = vpop.f32.mrb[112].mxu0  ;;  %v2091_v42 = vpop.f32.mrb[112].mxu1 }
 0x30e   :  { %v1899_v43 = vadd.f32 %v1898_v10, %v4284_v56  ;;  %v2092_v13 = vadd.f32 %v2091_v42, %v4287_v63  ;;  %v1900_v14 = vpop.f32.mrb[113].mxu0  ;;  %v2093_v46 = vpop.f32.mrb[113].mxu1  ;;  %v1155_v42 = vsub.s32 5, %v3561_v38 }
 0x30f   :  { %v1901_v47 = vadd.f32 %v1900_v14, %v4293_v4  ;;  %v2094_v19 = vadd.f32 %v2093_v46, %v4296_v11  ;;  %v1902_v20 = vpop.f32.mrb[114].mxu0  ;;  %v2095_v0 = vpop.f32.mrb[114].mxu1 }
 0x310   :  { %2653 = vst [vmem:[%s5263_s7 + $0x540] sm:$0xff] %v1899_v43  ;;  %2655 = vst [vmem:[%s5263_s7 + $0x550] sm:$0xff] %v2092_v13  ;;  %v1903_v21 = vadd.f32 %v1902_v20, %v4284_v56  ;;  %v2096_v35 = vadd.f32 %v2095_v0, %v4287_v63  ;;  %v1904_v1 = vpop.f32.mrb[115].mxu0  ;;  %v2097_v58 = vpop.f32.mrb[115].mxu1  ;;  %v1159_v20 = vsub.s32 6, %v3561_v38  ;;  %v4835_v38 = vrot.slane %v4277_v31, %v1155_v42 }
 0x311   :  { %2654 = vst [vmem:[%s5263_s7 + $0x548] sm:$0xff] %v1901_v47  ;;  %2656 = vst [vmem:[%s5263_s7 + $0x558] sm:$0xff] %v2094_v19  ;;  %v1905_v49 = vadd.f32 %v1904_v1, %v4293_v4  ;;  %v2098_v50 = vadd.f32 %v2097_v58, %v4296_v11 }
 0x312   :  { %2660 = vst [vmem:[%s5263_s7 + $0x578] sm:$0xff] %v1903_v21  ;;  %2662 = vst [vmem:[%s5263_s7 + $0x588] sm:$0xff] %v2096_v35 }
 0x313   :  { %2661 = vst [vmem:[%s5263_s7 + $0x580] sm:$0xff] %v1905_v49  ;;  %2663 = vst [vmem:[%s5263_s7 + $0x590] sm:$0xff] %v2098_v50 }
 0x315   :  { %v1908_v54 = vpop.f32.mrb[116].mxu0  ;;  %v2101_v3 = vpop.f32.mrb[116].mxu1 }
 0x316   :  { %v1909_v53 = vadd.f32 %v1908_v54, %v4284_v56  ;;  %v2102_v5 = vadd.f32 %v2101_v3, %v4287_v63  ;;  %v1910_v55 = vpop.f32.mrb[117].mxu0  ;;  %v2103_v39 = vpop.f32.mrb[117].mxu1 }
 0x317   :  { %v1911_v12 = vadd.f32 %v1910_v55, %v4293_v4  ;;  %v2104_v30 = vadd.f32 %v2103_v39, %v4296_v11  ;;  %v1912_v16 = vpop.f32.mrb[118].mxu0  ;;  %v2105_v17 = vpop.f32.mrb[118].mxu1 }
 0x318   :  { %2667 = vst [vmem:[%s5263_s7 + $0x5b0] sm:$0xff] %v1909_v53  ;;  %2669 = vst [vmem:[%s5263_s7 + $0x5c0] sm:$0xff] %v2102_v5  ;;  %v1913_v48 = vadd.f32 %v1912_v16, %v4284_v56  ;;  %v2106_v45 = vadd.f32 %v2105_v17, %v4287_v63  ;;  %v1914_v52 = vpop.f32.mrb[119].mxu0  ;;  %v2107_v15 = vpop.f32.mrb[119].mxu1 }
 0x319   :  { %2668 = vst [vmem:[%s5263_s7 + $0x5b8] sm:$0xff] %v1911_v12  ;;  %2670 = vst [vmem:[%s5263_s7 + $0x5c8] sm:$0xff] %v2104_v30  ;;  %v1915_v8 = vadd.f32 %v1914_v52, %v4293_v4  ;;  %v2108_v22 = vadd.f32 %v2107_v15, %v4296_v11 }
 0x31a   :  { %2674 = vst [vmem:[%s5263_s7 + $0x5e8] sm:$0xff] %v1913_v48  ;;  %2676 = vst [vmem:[%s5263_s7 + $0x5f8] sm:$0xff] %v2106_v45 }
 0x31b   :  { %2675 = vst [vmem:[%s5263_s7 + $0x5f0] sm:$0xff] %v1915_v8  ;;  %2677 = vst [vmem:[%s5263_s7 + $0x600] sm:$0xff] %v2108_v22 }
 0x31d   :  { %v1918_v26 = vpop.f32.mrb[120].mxu0  ;;  %v2111_v40 = vpop.f32.mrb[120].mxu1 }
 0x31e   :  { %v1919_v36 = vadd.f32 %v1918_v26, %v4284_v56  ;;  %v2112_v29 = vadd.f32 %v2111_v40, %v4287_v63  ;;  %v1920_v44 = vpop.f32.mrb[121].mxu0  ;;  %v2113_v34 = vpop.f32.mrb[121].mxu1 }
 0x31f   :  { %v1921_v37 = vadd.f32 %v1920_v44, %v4293_v4  ;;  %v2114_v28 = vadd.f32 %v2113_v34, %v4296_v11  ;;  %v1922_v51 = vpop.f32.mrb[122].mxu0  ;;  %v2115_v57 = vpop.f32.mrb[122].mxu1 }
 0x320   :  { %2681 = vst [vmem:[%s5263_s7 + $0x620] sm:$0xff] %v1919_v36  ;;  %2683 = vst [vmem:[%s5263_s7 + $0x630] sm:$0xff] %v2112_v29  ;;  %v1923_v41 = vadd.f32 %v1922_v51, %v4284_v56  ;;  %v2116_v7 = vadd.f32 %v2115_v57, %v4287_v63  ;;  %v1924_v60 = vpop.f32.mrb[123].mxu0  ;;  %v2117_v61 = vpop.f32.mrb[123].mxu1 }
 0x321   :  { %2682 = vst [vmem:[%s5263_s7 + $0x628] sm:$0xff] %v1921_v37  ;;  %2684 = vst [vmem:[%s5263_s7 + $0x638] sm:$0xff] %v2114_v28  ;;  %v1925_v2 = vadd.f32 %v1924_v60, %v4293_v4  ;;  %v2118_v9 = vadd.f32 %v2117_v61, %v4296_v11 }
 0x322   :  { %2688 = vst [vmem:[%s5263_s7 + $0x658] sm:$0xff] %v1923_v41  ;;  %2690 = vst [vmem:[%s5263_s7 + $0x668] sm:$0xff] %v2116_v7 }
 0x323   :  { %2689 = vst [vmem:[%s5263_s7 + $0x660] sm:$0xff] %v1925_v2  ;;  %2691 = vst [vmem:[%s5263_s7 + $0x670] sm:$0xff] %v2118_v9 }
 0x325   :  { %v1928_v18 = vpop.f32.mrb[124].mxu0  ;;  %v2121_v25 = vpop.f32.mrb[124].mxu1 }
 0x326   :  { %v1929_v27 = vadd.f32 %v1928_v18, %v4284_v56  ;;  %v2122_v59 = vadd.f32 %v2121_v25, %v4287_v63  ;;  %v1930_v24 = vpop.f32.mrb[125].mxu0  ;;  %v2123_v62 = vpop.f32.mrb[125].mxu1 }
 0x327   :  { %v1931_v33 = vadd.f32 %v1930_v24, %v4293_v4  ;;  %v2124_v23 = vadd.f32 %v2123_v62, %v4296_v11  ;;  %v1932_v6 = vpop.f32.mrb[126].mxu0  ;;  %v2125_v10 = vpop.f32.mrb[126].mxu1 }
 0x328   :  { %2695 = vst [vmem:[%s5263_s7 + $0x690] sm:$0xff] %v1929_v27  ;;  %2697 = vst [vmem:[%s5263_s7 + $0x6a0] sm:$0xff] %v2122_v59  ;;  %v1933_v43 = vadd.f32 %v1932_v6, %v4284_v56  ;;  %v2126_v13 = vadd.f32 %v2125_v10, %v4287_v63  ;;  %v1934_v14 = vpop.f32.mrb[127].mxu0  ;;  %v2127_v46 = vpop.f32.mrb[127].mxu1  ;;  %v4826_v56 = vrot.slane %v4277_v31, %v1151_v32 }
 0x329   :  { %2696 = vst [vmem:[%s5263_s7 + $0x698] sm:$0xff] %v1931_v33  ;;  %2698 = vst [vmem:[%s5263_s7 + $0x6a8] sm:$0xff] %v2124_v23  ;;  %v1935_v47 = vadd.f32 %v1934_v14, %v4293_v4  ;;  %v2128_v19 = vadd.f32 %v2127_v46, %v4296_v11  ;;  %v4838_v11 = vrot.slane %v4277_v31, %v1159_v20 }
 0x32a   :  { %2702 = vst [vmem:[%s5263_s7 + $0x6c8] sm:$0xff] %v1933_v43  ;;  %2704 = vst [vmem:[%s5263_s7 + $0x6d8] sm:$0xff] %v2126_v13 }
 0x32b   :  { %2703 = vst [vmem:[%s5263_s7 + $0x6d0] sm:$0xff] %v1935_v47  ;;  %2705 = vst [vmem:[%s5263_s7 + $0x6e0] sm:$0xff] %v2128_v19 }
 0x32d   :  { %v2164_v63 = vpop.f32.mrb[128].mxu0  ;;  %v2916_v4 = vpop.f32.mrb[128].mxu1 }
 0x32e   :  { %v2165_v0 = vadd.f32 %v2164_v63, %v4826_v56  ;;  %v2166_v21 = vpop.f32.mrb[129].mxu0  ;;  %v2917_v35 = vpop.f32.mrb[129].mxu1 }
 0x32f   :  { %v2167_v1 = vadd.f32 %v2166_v21, %v4835_v38  ;;  %v2918_v58 = vadd.f32 %v2917_v35, %v2916_v4  ;;  %v2168_v49 = vpop.f32.mrb[130].mxu0  ;;  %v2919_v50 = vpop.f32.mrb[130].mxu1 }
 0x330   :  { %2488 = vst [vmem:[%s5263_s7 + $0x20] sm:$0xff] %v2165_v0  ;;  %v2169_v54 = vadd.f32 %v2168_v49, %v4826_v56  ;;  %v2170_v3 = vpop.f32.mrb[131].mxu0  ;;  %v2920_v53 = vpop.f32.mrb[131].mxu1 }
 0x331   :  { %2489 = vst [vmem:[%s5263_s7 + $0x28] sm:$0xff] %v2167_v1  ;;  %v2374_v31 = vadd.f32 %v2918_v58, %v4838_v11  ;;  %v2171_v5 = vadd.f32 %v2170_v3, %v4835_v38  ;;  %v2921_v55 = vadd.f32 %v2920_v53, %v2919_v50 }
 0x332   :  { %2496 = vst [vmem:[%s5263_s7 + $0x58] sm:$0xff] %v2169_v54 }
 0x333   :  { %2519 = vst.msk [vmem:[%s5263_s7 + $0x110] sm:$0xff] %vm2490_vm2, %v2374_v31  ;;  %2497 = vst [vmem:[%s5263_s7 + $0x60] sm:$0xff] %v2171_v5  ;;  %v2377_v39 = vadd.f32 %v2921_v55, %v4838_v11 }
 0x335   :  { %2526 = vst.msk [vmem:[%s5263_s7 + $0x148] sm:$0xff] %vm2490_vm2, %v2377_v39  ;;  %v2174_v12 = vpop.f32.mrb[132].mxu0  ;;  %v2922_v30 = vpop.f32.mrb[132].mxu1 }
 0x336   :  { %v2175_v16 = vadd.f32 %v2174_v12, %v4826_v56  ;;  %v2176_v17 = vpop.f32.mrb[133].mxu0  ;;  %v2923_v48 = vpop.f32.mrb[133].mxu1 }
 0x337   :  { %v2177_v45 = vadd.f32 %v2176_v17, %v4835_v38  ;;  %v2924_v52 = vadd.f32 %v2923_v48, %v2922_v30  ;;  %v2178_v15 = vpop.f32.mrb[134].mxu0  ;;  %v2925_v8 = vpop.f32.mrb[134].mxu1 }
 0x338   :  { %2503 = vst [vmem:[%s5263_s7 + $0x90] sm:$0xff] %v2175_v16  ;;  %v2179_v22 = vadd.f32 %v2178_v15, %v4826_v56  ;;  %v2180_v26 = vpop.f32.mrb[135].mxu0  ;;  %v2926_v40 = vpop.f32.mrb[135].mxu1 }
 0x339   :  { %2504 = vst [vmem:[%s5263_s7 + $0x98] sm:$0xff] %v2177_v45  ;;  %v2382_v36 = vadd.f32 %v2924_v52, %v4838_v11  ;;  %v2181_v29 = vadd.f32 %v2180_v26, %v4835_v38  ;;  %v2927_v44 = vadd.f32 %v2926_v40, %v2925_v8 }
 0x33a   :  { %2510 = vst [vmem:[%s5263_s7 + $0xc8] sm:$0xff] %v2179_v22 }
 0x33b   :  { %2533 = vst.msk [vmem:[%s5263_s7 + $0x180] sm:$0xff] %vm2490_vm2, %v2382_v36  ;;  %2511 = vst [vmem:[%s5263_s7 + $0xd0] sm:$0xff] %v2181_v29  ;;  %v2385_v34 = vadd.f32 %v2927_v44, %v4838_v11 }
 0x33d   :  { %2540 = vst.msk [vmem:[%s5263_s7 + $0x1b8] sm:$0xff] %vm2490_vm2, %v2385_v34  ;;  %v2184_v37 = vpop.f32.mrb[136].mxu0  ;;  %v2928_v28 = vpop.f32.mrb[136].mxu1 }
 0x33e   :  { %v2185_v51 = vadd.f32 %v2184_v37, %v4826_v56  ;;  %v2186_v57 = vpop.f32.mrb[137].mxu0  ;;  %v2929_v41 = vpop.f32.mrb[137].mxu1 }
 0x33f   :  { %v2187_v7 = vadd.f32 %v2186_v57, %v4835_v38  ;;  %v2930_v60 = vadd.f32 %v2929_v41, %v2928_v28  ;;  %v2188_v61 = vpop.f32.mrb[138].mxu0  ;;  %v2931_v2 = vpop.f32.mrb[138].mxu1 }
 0x340   :  { %2517 = vst [vmem:[%s5263_s7 + $0x100] sm:$0xff] %v2185_v51  ;;  %v2189_v9 = vadd.f32 %v2188_v61, %v4826_v56  ;;  %v2190_v18 = vpop.f32.mrb[139].mxu0  ;;  %v2932_v25 = vpop.f32.mrb[139].mxu1 }
 0x341   :  { %2518 = vst [vmem:[%s5263_s7 + $0x108] sm:$0xff] %v2187_v7  ;;  %v2390_v27 = vadd.f32 %v2930_v60, %v4838_v11  ;;  %v2191_v59 = vadd.f32 %v2190_v18, %v4835_v38  ;;  %v2933_v24 = vadd.f32 %v2932_v25, %v2931_v2 }
 0x342   :  { %2524 = vst [vmem:[%s5263_s7 + $0x138] sm:$0xff] %v2189_v9 }
 0x343   :  { %2547 = vst.msk [vmem:[%s5263_s7 + $0x1f0] sm:$0xff] %vm2490_vm2, %v2390_v27  ;;  %2525 = vst [vmem:[%s5263_s7 + $0x140] sm:$0xff] %v2191_v59  ;;  %v2393_v62 = vadd.f32 %v2933_v24, %v4838_v11 }
 0x345   :  { %2554 = vst.msk [vmem:[%s5263_s7 + $0x228] sm:$0xff] %vm2490_vm2, %v2393_v62  ;;  %v2194_v32 = vpop.f32.mrb[140].mxu0  ;;  %v2934_v33 = vpop.f32.mrb[140].mxu1 }
 0x346   :  { %v2195_v23 = vadd.f32 %v2194_v32, %v4826_v56  ;;  %v2196_v6 = vpop.f32.mrb[141].mxu0  ;;  %v2935_v10 = vpop.f32.mrb[141].mxu1 }
 0x347   :  { %v2197_v42 = vadd.f32 %v2196_v6, %v4835_v38  ;;  %v2936_v43 = vadd.f32 %v2935_v10, %v2934_v33  ;;  %v2198_v13 = vpop.f32.mrb[142].mxu0  ;;  %v2937_v14 = vpop.f32.mrb[142].mxu1 }
 0x348   :  { %2531 = vst [vmem:[%s5263_s7 + $0x170] sm:$0xff] %v2195_v23  ;;  %v2199_v46 = vadd.f32 %v2198_v13, %v4826_v56  ;;  %v2200_v47 = vpop.f32.mrb[143].mxu0  ;;  %v2938_v19 = vpop.f32.mrb[143].mxu1 }
 0x349   :  { %2532 = vst [vmem:[%s5263_s7 + $0x178] sm:$0xff] %v2197_v42  ;;  %v2398_v20 = vadd.f32 %v2936_v43, %v4838_v11  ;;  %v2201_v63 = vadd.f32 %v2200_v47, %v4835_v38  ;;  %v2939_v4 = vadd.f32 %v2938_v19, %v2937_v14 }
 0x34a   :  { %2538 = vst [vmem:[%s5263_s7 + $0x1a8] sm:$0xff] %v2199_v46 }
 0x34b   :  { %2561 = vst.msk [vmem:[%s5263_s7 + $0x260] sm:$0xff] %vm2490_vm2, %v2398_v20  ;;  %2539 = vst [vmem:[%s5263_s7 + $0x1b0] sm:$0xff] %v2201_v63  ;;  %v2401_v0 = vadd.f32 %v2939_v4, %v4838_v11 }
 0x34d   :  { %2568 = vst.msk [vmem:[%s5263_s7 + $0x298] sm:$0xff] %vm2490_vm2, %v2401_v0  ;;  %v2204_v21 = vpop.f32.mrb[144].mxu0  ;;  %v2940_v35 = vpop.f32.mrb[144].mxu1 }
 0x34e   :  { %v2205_v1 = vadd.f32 %v2204_v21, %v4826_v56  ;;  %v2206_v58 = vpop.f32.mrb[145].mxu0  ;;  %v2941_v49 = vpop.f32.mrb[145].mxu1 }
 0x34f   :  { %v2207_v50 = vadd.f32 %v2206_v58, %v4835_v38  ;;  %v2942_v54 = vadd.f32 %v2941_v49, %v2940_v35  ;;  %v2208_v3 = vpop.f32.mrb[146].mxu0  ;;  %v2943_v53 = vpop.f32.mrb[146].mxu1 }
 0x350   :  { %2545 = vst [vmem:[%s5263_s7 + $0x1e0] sm:$0xff] %v2205_v1  ;;  %v2209_v31 = vadd.f32 %v2208_v3, %v4826_v56  ;;  %v2210_v5 = vpop.f32.mrb[147].mxu0  ;;  %v2944_v55 = vpop.f32.mrb[147].mxu1 }
 0x351   :  { %2546 = vst [vmem:[%s5263_s7 + $0x1e8] sm:$0xff] %v2207_v50  ;;  %v2406_v39 = vadd.f32 %v2942_v54, %v4838_v11  ;;  %v2211_v12 = vadd.f32 %v2210_v5, %v4835_v38  ;;  %v2945_v30 = vadd.f32 %v2944_v55, %v2943_v53 }
 0x352   :  { %2552 = vst [vmem:[%s5263_s7 + $0x218] sm:$0xff] %v2209_v31 }
 0x353   :  { %2575 = vst.msk [vmem:[%s5263_s7 + $0x2d0] sm:$0xff] %vm2490_vm2, %v2406_v39  ;;  %2553 = vst [vmem:[%s5263_s7 + $0x220] sm:$0xff] %v2211_v12  ;;  %v2409_v16 = vadd.f32 %v2945_v30, %v4838_v11 }
 0x355   :  { %2582 = vst.msk [vmem:[%s5263_s7 + $0x308] sm:$0xff] %vm2490_vm2, %v2409_v16  ;;  %v2214_v17 = vpop.f32.mrb[148].mxu0  ;;  %v2946_v48 = vpop.f32.mrb[148].mxu1 }
 0x356   :  { %v2215_v45 = vadd.f32 %v2214_v17, %v4826_v56  ;;  %v2216_v52 = vpop.f32.mrb[149].mxu0  ;;  %v2947_v15 = vpop.f32.mrb[149].mxu1 }
 0x357   :  { %v2217_v8 = vadd.f32 %v2216_v52, %v4835_v38  ;;  %v2948_v22 = vadd.f32 %v2947_v15, %v2946_v48  ;;  %v2218_v26 = vpop.f32.mrb[150].mxu0  ;;  %v2949_v40 = vpop.f32.mrb[150].mxu1 }
 0x358   :  { %2559 = vst [vmem:[%s5263_s7 + $0x250] sm:$0xff] %v2215_v45  ;;  %v2219_v36 = vadd.f32 %v2218_v26, %v4826_v56  ;;  %v2220_v29 = vpop.f32.mrb[151].mxu0  ;;  %v2950_v44 = vpop.f32.mrb[151].mxu1 }
 0x359   :  { %2560 = vst [vmem:[%s5263_s7 + $0x258] sm:$0xff] %v2217_v8  ;;  %v2414_v34 = vadd.f32 %v2948_v22, %v4838_v11  ;;  %v2221_v37 = vadd.f32 %v2220_v29, %v4835_v38  ;;  %v2951_v28 = vadd.f32 %v2950_v44, %v2949_v40 }
 0x35a   :  { %2566 = vst [vmem:[%s5263_s7 + $0x288] sm:$0xff] %v2219_v36 }
 0x35b   :  { %2589 = vst.msk [vmem:[%s5263_s7 + $0x340] sm:$0xff] %vm2490_vm2, %v2414_v34  ;;  %2567 = vst [vmem:[%s5263_s7 + $0x290] sm:$0xff] %v2221_v37  ;;  %v2417_v51 = vadd.f32 %v2951_v28, %v4838_v11 }
 0x35d   :  { %2596 = vst.msk [vmem:[%s5263_s7 + $0x378] sm:$0xff] %vm2490_vm2, %v2417_v51  ;;  %v2224_v57 = vpop.f32.mrb[152].mxu0  ;;  %v2952_v41 = vpop.f32.mrb[152].mxu1 }
 0x35e   :  { %v2225_v7 = vadd.f32 %v2224_v57, %v4826_v56  ;;  %v2226_v60 = vpop.f32.mrb[153].mxu0  ;;  %v2953_v61 = vpop.f32.mrb[153].mxu1 }
 0x35f   :  { %v2227_v2 = vadd.f32 %v2226_v60, %v4835_v38  ;;  %v2954_v9 = vadd.f32 %v2953_v61, %v2952_v41  ;;  %v2228_v18 = vpop.f32.mrb[154].mxu0  ;;  %v2955_v25 = vpop.f32.mrb[154].mxu1 }
 0x360   :  { %2573 = vst [vmem:[%s5263_s7 + $0x2c0] sm:$0xff] %v2225_v7  ;;  %v2229_v27 = vadd.f32 %v2228_v18, %v4826_v56  ;;  %v2230_v59 = vpop.f32.mrb[155].mxu0  ;;  %v2956_v24 = vpop.f32.mrb[155].mxu1 }
 0x361   :  { %2574 = vst [vmem:[%s5263_s7 + $0x2c8] sm:$0xff] %v2227_v2  ;;  %v2422_v62 = vadd.f32 %v2954_v9, %v4838_v11  ;;  %v2231_v32 = vadd.f32 %v2230_v59, %v4835_v38  ;;  %v2957_v33 = vadd.f32 %v2956_v24, %v2955_v25 }
 0x362   :  { %2580 = vst [vmem:[%s5263_s7 + $0x2f8] sm:$0xff] %v2229_v27 }
 0x363   :  { %2603 = vst.msk [vmem:[%s5263_s7 + $0x3b0] sm:$0xff] %vm2490_vm2, %v2422_v62  ;;  %2581 = vst [vmem:[%s5263_s7 + $0x300] sm:$0xff] %v2231_v32  ;;  %v2425_v23 = vadd.f32 %v2957_v33, %v4838_v11 }
 0x365   :  { %2610 = vst.msk [vmem:[%s5263_s7 + $0x3e8] sm:$0xff] %vm2490_vm2, %v2425_v23  ;;  %v2234_v6 = vpop.f32.mrb[156].mxu0  ;;  %v2958_v10 = vpop.f32.mrb[156].mxu1 }
 0x366   :  { %v2235_v42 = vadd.f32 %v2234_v6, %v4826_v56  ;;  %v2236_v43 = vpop.f32.mrb[157].mxu0  ;;  %v2959_v13 = vpop.f32.mrb[157].mxu1 }
 0x367   :  { %v2237_v14 = vadd.f32 %v2236_v43, %v4835_v38  ;;  %v2960_v46 = vadd.f32 %v2959_v13, %v2958_v10  ;;  %v2238_v47 = vpop.f32.mrb[158].mxu0  ;;  %v2961_v19 = vpop.f32.mrb[158].mxu1 }
 0x368   :  { %2587 = vst [vmem:[%s5263_s7 + $0x330] sm:$0xff] %v2235_v42  ;;  %v2239_v20 = vadd.f32 %v2238_v47, %v4826_v56  ;;  %v2240_v63 = vpop.f32.mrb[159].mxu0  ;;  %v2962_v4 = vpop.f32.mrb[159].mxu1 }
 0x369   :  { %2588 = vst [vmem:[%s5263_s7 + $0x338] sm:$0xff] %v2237_v14  ;;  %v2430_v0 = vadd.f32 %v2960_v46, %v4838_v11  ;;  %v2241_v21 = vadd.f32 %v2240_v63, %v4835_v38  ;;  %v2963_v35 = vadd.f32 %v2962_v4, %v2961_v19 }
 0x36a   :  { %2594 = vst [vmem:[%s5263_s7 + $0x368] sm:$0xff] %v2239_v20 }
 0x36b   :  { %2617 = vst.msk [vmem:[%s5263_s7 + $0x420] sm:$0xff] %vm2490_vm2, %v2430_v0  ;;  %2595 = vst [vmem:[%s5263_s7 + $0x370] sm:$0xff] %v2241_v21  ;;  %v2433_v1 = vadd.f32 %v2963_v35, %v4838_v11 }
 0x36d   :  { %2624 = vst.msk [vmem:[%s5263_s7 + $0x458] sm:$0xff] %vm2490_vm2, %v2433_v1  ;;  %v2244_v58 = vpop.f32.mrb[160].mxu0  ;;  %v2964_v49 = vpop.f32.mrb[160].mxu1 }
 0x36e   :  { %v2245_v50 = vadd.f32 %v2244_v58, %v4826_v56  ;;  %v2246_v54 = vpop.f32.mrb[161].mxu0  ;;  %v2965_v3 = vpop.f32.mrb[161].mxu1 }
 0x36f   :  { %v2247_v53 = vadd.f32 %v2246_v54, %v4835_v38  ;;  %v2966_v31 = vadd.f32 %v2965_v3, %v2964_v49  ;;  %v2248_v5 = vpop.f32.mrb[162].mxu0  ;;  %v2967_v55 = vpop.f32.mrb[162].mxu1 }
 0x370   :  { %2601 = vst [vmem:[%s5263_s7 + $0x3a0] sm:$0xff] %v2245_v50  ;;  %v2249_v39 = vadd.f32 %v2248_v5, %v4826_v56  ;;  %v2250_v12 = vpop.f32.mrb[163].mxu0  ;;  %v2968_v30 = vpop.f32.mrb[163].mxu1 }
 0x371   :  { %2602 = vst [vmem:[%s5263_s7 + $0x3a8] sm:$0xff] %v2247_v53  ;;  %v2438_v16 = vadd.f32 %v2966_v31, %v4838_v11  ;;  %v2251_v17 = vadd.f32 %v2250_v12, %v4835_v38  ;;  %v2969_v48 = vadd.f32 %v2968_v30, %v2967_v55 }
 0x372   :  { %2608 = vst [vmem:[%s5263_s7 + $0x3d8] sm:$0xff] %v2249_v39 }
 0x373   :  { %2631 = vst.msk [vmem:[%s5263_s7 + $0x490] sm:$0xff] %vm2490_vm2, %v2438_v16  ;;  %2609 = vst [vmem:[%s5263_s7 + $0x3e0] sm:$0xff] %v2251_v17  ;;  %v2441_v45 = vadd.f32 %v2969_v48, %v4838_v11 }
 0x375   :  { %2638 = vst.msk [vmem:[%s5263_s7 + $0x4c8] sm:$0xff] %vm2490_vm2, %v2441_v45  ;;  %v2254_v52 = vpop.f32.mrb[164].mxu0  ;;  %v2970_v15 = vpop.f32.mrb[164].mxu1 }
 0x376   :  { %v2255_v8 = vadd.f32 %v2254_v52, %v4826_v56  ;;  %v2256_v22 = vpop.f32.mrb[165].mxu0  ;;  %v2971_v26 = vpop.f32.mrb[165].mxu1 }
 0x377   :  { %v2257_v40 = vadd.f32 %v2256_v22, %v4835_v38  ;;  %v2972_v36 = vadd.f32 %v2971_v26, %v2970_v15  ;;  %v2258_v29 = vpop.f32.mrb[166].mxu0  ;;  %v2973_v44 = vpop.f32.mrb[166].mxu1 }
 0x378   :  { %2615 = vst [vmem:[%s5263_s7 + $0x410] sm:$0xff] %v2255_v8  ;;  %v2259_v34 = vadd.f32 %v2258_v29, %v4826_v56  ;;  %v2260_v37 = vpop.f32.mrb[167].mxu0  ;;  %v2974_v28 = vpop.f32.mrb[167].mxu1 }
 0x379   :  { %2616 = vst [vmem:[%s5263_s7 + $0x418] sm:$0xff] %v2257_v40  ;;  %v2446_v51 = vadd.f32 %v2972_v36, %v4838_v11  ;;  %v2261_v57 = vadd.f32 %v2260_v37, %v4835_v38  ;;  %v2975_v41 = vadd.f32 %v2974_v28, %v2973_v44 }
 0x37a   :  { %2622 = vst [vmem:[%s5263_s7 + $0x448] sm:$0xff] %v2259_v34 }
 0x37b   :  { %2645 = vst.msk [vmem:[%s5263_s7 + $0x500] sm:$0xff] %vm2490_vm2, %v2446_v51  ;;  %2623 = vst [vmem:[%s5263_s7 + $0x450] sm:$0xff] %v2261_v57  ;;  %v2449_v7 = vadd.f32 %v2975_v41, %v4838_v11 }
 0x37d   :  { %2652 = vst.msk [vmem:[%s5263_s7 + $0x538] sm:$0xff] %vm2490_vm2, %v2449_v7  ;;  %v2264_v60 = vpop.f32.mrb[168].mxu0  ;;  %v2976_v61 = vpop.f32.mrb[168].mxu1 }
 0x37e   :  { %v2265_v2 = vadd.f32 %v2264_v60, %v4826_v56  ;;  %v2266_v9 = vpop.f32.mrb[169].mxu0  ;;  %v2977_v18 = vpop.f32.mrb[169].mxu1 }
 0x37f   :  { %v2267_v25 = vadd.f32 %v2266_v9, %v4835_v38  ;;  %v2978_v27 = vadd.f32 %v2977_v18, %v2976_v61  ;;  %v2268_v59 = vpop.f32.mrb[170].mxu0  ;;  %v2979_v24 = vpop.f32.mrb[170].mxu1 }
 0x380   :  { %2629 = vst [vmem:[%s5263_s7 + $0x480] sm:$0xff] %v2265_v2  ;;  %v2269_v62 = vadd.f32 %v2268_v59, %v4826_v56  ;;  %v2270_v32 = vpop.f32.mrb[171].mxu0  ;;  %v2980_v33 = vpop.f32.mrb[171].mxu1 }
 0x381   :  { %2630 = vst [vmem:[%s5263_s7 + $0x488] sm:$0xff] %v2267_v25  ;;  %v2454_v23 = vadd.f32 %v2978_v27, %v4838_v11  ;;  %v2271_v6 = vadd.f32 %v2270_v32, %v4835_v38  ;;  %v2981_v10 = vadd.f32 %v2980_v33, %v2979_v24 }
 0x382   :  { %2636 = vst [vmem:[%s5263_s7 + $0x4b8] sm:$0xff] %v2269_v62 }
 0x383   :  { %2659 = vst.msk [vmem:[%s5263_s7 + $0x570] sm:$0xff] %vm2490_vm2, %v2454_v23  ;;  %2637 = vst [vmem:[%s5263_s7 + $0x4c0] sm:$0xff] %v2271_v6  ;;  %v2457_v42 = vadd.f32 %v2981_v10, %v4838_v11 }
 0x385   :  { %2666 = vst.msk [vmem:[%s5263_s7 + $0x5a8] sm:$0xff] %vm2490_vm2, %v2457_v42  ;;  %v2274_v43 = vpop.f32.mrb[172].mxu0  ;;  %v2982_v13 = vpop.f32.mrb[172].mxu1 }
 0x386   :  { %v2275_v14 = vadd.f32 %v2274_v43, %v4826_v56  ;;  %v2276_v46 = vpop.f32.mrb[173].mxu0  ;;  %v2983_v47 = vpop.f32.mrb[173].mxu1 }
 0x387   :  { %v2277_v19 = vadd.f32 %v2276_v46, %v4835_v38  ;;  %v2984_v20 = vadd.f32 %v2983_v47, %v2982_v13  ;;  %v2278_v63 = vpop.f32.mrb[174].mxu0  ;;  %v2985_v4 = vpop.f32.mrb[174].mxu1 }
 0x388   :  { %2643 = vst [vmem:[%s5263_s7 + $0x4f0] sm:$0xff] %v2275_v14  ;;  %v2279_v0 = vadd.f32 %v2278_v63, %v4826_v56  ;;  %v2280_v21 = vpop.f32.mrb[175].mxu0  ;;  %v2986_v35 = vpop.f32.mrb[175].mxu1 }
 0x389   :  { %2644 = vst [vmem:[%s5263_s7 + $0x4f8] sm:$0xff] %v2277_v19  ;;  %v2462_v1 = vadd.f32 %v2984_v20, %v4838_v11  ;;  %v2281_v58 = vadd.f32 %v2280_v21, %v4835_v38  ;;  %v2987_v49 = vadd.f32 %v2986_v35, %v2985_v4 }
 0x38a   :  { %2650 = vst [vmem:[%s5263_s7 + $0x528] sm:$0xff] %v2279_v0 }
 0x38b   :  { %2673 = vst.msk [vmem:[%s5263_s7 + $0x5e0] sm:$0xff] %vm2490_vm2, %v2462_v1  ;;  %2651 = vst [vmem:[%s5263_s7 + $0x530] sm:$0xff] %v2281_v58  ;;  %v2465_v50 = vadd.f32 %v2987_v49, %v4838_v11 }
 0x38d   :  { %2680 = vst.msk [vmem:[%s5263_s7 + $0x618] sm:$0xff] %vm2490_vm2, %v2465_v50  ;;  %v2284_v54 = vpop.f32.mrb[176].mxu0  ;;  %v2988_v3 = vpop.f32.mrb[176].mxu1 }
 0x38e   :  { %v2285_v53 = vadd.f32 %v2284_v54, %v4826_v56  ;;  %v2286_v31 = vpop.f32.mrb[177].mxu0  ;;  %v2989_v5 = vpop.f32.mrb[177].mxu1 }
 0x38f   :  { %v2287_v55 = vadd.f32 %v2286_v31, %v4835_v38  ;;  %v2990_v39 = vadd.f32 %v2989_v5, %v2988_v3  ;;  %v2288_v12 = vpop.f32.mrb[178].mxu0  ;;  %v2991_v30 = vpop.f32.mrb[178].mxu1 }
 0x390   :  { %2657 = vst [vmem:[%s5263_s7 + $0x560] sm:$0xff] %v2285_v53  ;;  %v2289_v16 = vadd.f32 %v2288_v12, %v4826_v56  ;;  %v2290_v17 = vpop.f32.mrb[179].mxu0  ;;  %v2992_v48 = vpop.f32.mrb[179].mxu1 }
 0x391   :  { %2658 = vst [vmem:[%s5263_s7 + $0x568] sm:$0xff] %v2287_v55  ;;  %v2470_v45 = vadd.f32 %v2990_v39, %v4838_v11  ;;  %v2291_v52 = vadd.f32 %v2290_v17, %v4835_v38  ;;  %v2993_v15 = vadd.f32 %v2992_v48, %v2991_v30 }
 0x392   :  { %2664 = vst [vmem:[%s5263_s7 + $0x598] sm:$0xff] %v2289_v16 }
 0x393   :  { %2687 = vst.msk [vmem:[%s5263_s7 + $0x650] sm:$0xff] %vm2490_vm2, %v2470_v45  ;;  %2665 = vst [vmem:[%s5263_s7 + $0x5a0] sm:$0xff] %v2291_v52  ;;  %v2473_v8 = vadd.f32 %v2993_v15, %v4838_v11 }
 0x395   :  { %2694 = vst.msk [vmem:[%s5263_s7 + $0x688] sm:$0xff] %vm2490_vm2, %v2473_v8  ;;  %v2294_v22 = vpop.f32.mrb[180].mxu0  ;;  %v2994_v26 = vpop.f32.mrb[180].mxu1 }
 0x396   :  { %v2295_v40 = vadd.f32 %v2294_v22, %v4826_v56  ;;  %v2296_v36 = vpop.f32.mrb[181].mxu0  ;;  %v2995_v29 = vpop.f32.mrb[181].mxu1 }
 0x397   :  { %v2297_v44 = vadd.f32 %v2296_v36, %v4835_v38  ;;  %v2996_v34 = vadd.f32 %v2995_v29, %v2994_v26  ;;  %v2298_v37 = vpop.f32.mrb[182].mxu0  ;;  %v2997_v28 = vpop.f32.mrb[182].mxu1 }
 0x398   :  { %2671 = vst [vmem:[%s5263_s7 + $0x5d0] sm:$0xff] %v2295_v40  ;;  %v2299_v51 = vadd.f32 %v2298_v37, %v4826_v56  ;;  %v2300_v57 = vpop.f32.mrb[183].mxu0  ;;  %v2998_v41 = vpop.f32.mrb[183].mxu1 }
 0x399   :  { %2672 = vst [vmem:[%s5263_s7 + $0x5d8] sm:$0xff] %v2297_v44  ;;  %v2478_v7 = vadd.f32 %v2996_v34, %v4838_v11  ;;  %v2301_v60 = vadd.f32 %v2300_v57, %v4835_v38  ;;  %v2999_v61 = vadd.f32 %v2998_v41, %v2997_v28 }
 0x39a   :  { %2678 = vst [vmem:[%s5263_s7 + $0x608] sm:$0xff] %v2299_v51 }
 0x39b   :  { %2701 = vst.msk [vmem:[%s5263_s7 + $0x6c0] sm:$0xff] %vm2490_vm2, %v2478_v7  ;;  %2679 = vst [vmem:[%s5263_s7 + $0x610] sm:$0xff] %v2301_v60  ;;  %v2481_v2 = vadd.f32 %v2999_v61, %v4838_v11 }
 0x39d   :  { %2708 = vst.msk [vmem:[%s5263_s7 + $0x6f8] sm:$0xff] %vm2490_vm2, %v2481_v2  ;;  %v2304_v9 = vpop.f32.mrb[184].mxu0 }
 0x39e   :  { %v2305_v18 = vadd.f32 %v2304_v9, %v4826_v56  ;;  %v2306_v25 = vpop.f32.mrb[185].mxu0 }
 0x39f   :  { %v2307_v27 = vadd.f32 %v2306_v25, %v4835_v38  ;;  %v2308_v59 = vpop.f32.mrb[186].mxu0 }
 0x3a0   :  { %2685 = vst [vmem:[%s5263_s7 + $0x640] sm:$0xff] %v2305_v18  ;;  %v2309_v24 = vadd.f32 %v2308_v59, %v4826_v56  ;;  %v2310_v62 = vpop.f32.mrb[187].mxu0 }
 0x3a1   :  { %2686 = vst [vmem:[%s5263_s7 + $0x648] sm:$0xff] %v2307_v27  ;;  %v2311_v32 = vadd.f32 %v2310_v62, %v4835_v38 }
 0x3a2   :  { %2692 = vst [vmem:[%s5263_s7 + $0x678] sm:$0xff] %v2309_v24 }
 0x3a3   :  { %2693 = vst [vmem:[%s5263_s7 + $0x680] sm:$0xff] %v2311_v32 }
 0x3a5   :  { %v2314_v33 = vpop.f32.mrb[188].mxu0 }
 0x3a6   :  { %v2315_v23 = vadd.f32 %v2314_v33, %v4826_v56  ;;  %v2316_v6 = vpop.f32.mrb[189].mxu0 }
 0x3a7   :  { %v2317_v10 = vadd.f32 %v2316_v6, %v4835_v38  ;;  %v2318_v42 = vpop.f32.mrb[190].mxu0 }
 0x3a8   :  { %2699 = vst [vmem:[%s5263_s7 + $0x6b0] sm:$0xff] %v2315_v23  ;;  %v2319_v43 = vadd.f32 %v2318_v42, %v4826_v56  ;;  %v2320_v13 = vpop.f32.mrb[191].mxu0 }
 0x3a9   :  { %2700 = vst [vmem:[%s5263_s7 + $0x6b8] sm:$0xff] %v2317_v10  ;;  %v2321_v14 = vadd.f32 %v2320_v13, %v4835_v38 }
 0x3aa   :  { %2706 = vst [vmem:[%s5263_s7 + $0x6e8] sm:$0xff] %v2319_v43 }
 0x3ab   :  { %2707 = vst [vmem:[%s5263_s7 + $0x6f0] sm:$0xff] %v2321_v14 }
 0x3ad   :  { %v2904_v46 = vpop.f32.mrb[192].mxu0 }
 0x3ae   :  { %v2905_v47 = vpop.f32.mrb[193].mxu0 }
 0x3af   :  { %v2906_v19 = vadd.f32 %v2905_v47, %v2904_v46  ;;  %v2907_v20 = vpop.f32.mrb[194].mxu0 }
 0x3b0   :  { %v2908_v56 = vpop.f32.mrb[195].mxu0 }
 0x3b1   :  { %v2358_v63 = vadd.f32 %v2906_v19, %v4838_v11  ;;  %v2909_v4 = vadd.f32 %v2908_v56, %v2907_v20 }
 0x3b3   :  { %2491 = vst.msk [vmem:[%s5263_s7 + $0x30] sm:$0xff] %vm2490_vm2, %v2358_v63  ;;  %v2361_v38 = vadd.f32 %v2909_v4, %v4838_v11 }
 0x3b5   :  { %2498 = vst.msk [vmem:[%s5263_s7 + $0x68] sm:$0xff] %vm2490_vm2, %v2361_v38  ;;  %v2910_v0 = vpop.f32.mrb[196].mxu0 }
 0x3b6   :  { %v2911_v21 = vpop.f32.mrb[197].mxu0 }
 0x3b7   :  { %v2912_v35 = vadd.f32 %v2911_v21, %v2910_v0  ;;  %v2913_v1 = vpop.f32.mrb[198].mxu0 }
 0x3b8   :  { %v2914_v58 = vpop.f32.mrb[199].mxu0 }
 0x3b9   :  { %v2366_v49 = vadd.f32 %v2912_v35, %v4838_v11  ;;  %v2915_v50 = vadd.f32 %v2914_v58, %v2913_v1 }
 0x3bb   :  { %2505 = vst.msk [vmem:[%s5263_s7 + $0xa0] sm:$0xff] %vm2490_vm2, %v2366_v49  ;;  %v2369_v54 = vadd.f32 %v2915_v50, %v4838_v11 }
 0x3bd   :  { %2512 = vst.msk [vmem:[%s5263_s7 + $0xd8] sm:$0xff] %vm2490_vm2, %v2369_v54 }

</bundles_post_ra>
